<compile_context>
chip_gen: v7x
topology: tpu7x:2x2x1
jax: 0.10.0
libtpu: 0.0.40
codegen_flags: <defaults>
</compile_context>

<pallas_src>
import functools

import jax
import jax.numpy as jnp
from jax.experimental import pallas as pl
from jax.experimental.pallas import tpu as pltpu

EPS = 1e-5


# ----------------------------- kernel -------------------------------------- #

def _linear_kernel(*refs, activation, apply_affine, compute_stats,
                   b_true, rows_valid_last, masked):
    """One batch tile of  y = act((x [* scale_in + shift_in]) @ W + b).

    If compute_stats: also accumulates per-feature sum / sum-of-squares of y over the
    full (true) batch in VMEM scratch and, on the last tile, emits the fused BatchNorm
    affine (scale_out, shift_out).  Padded batch rows (possible only in the last tile)
    are zeroed before the store and the accumulation, so no per-tile masking is needed.
    """
    refs = list(refs)
    x_ref = refs.pop(0)
    if apply_affine:
        scale_in_ref = refs.pop(0)
        shift_in_ref = refs.pop(0)
    w_ref = refs.pop(0)
    b_ref = refs.pop(0)
    if compute_stats:
        g_ref = refs.pop(0)
        be_ref = refs.pop(0)
        h_ref, scale_out_ref, shift_out_ref, sum_sc, sq_sc = refs
    else:
        (h_ref,) = refs

    i = pl.program_id(0)
    nb = pl.num_programs(0)

    x = x_ref[...].astype(jnp.float32)
    if apply_affine:
        # Fused BN affine of the previous layer (f32), then cast for the MXU.
        x = x * scale_in_ref[...] + shift_in_ref[...]
    y = jnp.dot(x.astype(w_ref.dtype), w_ref[...],
                preferred_element_type=jnp.float32) + b_ref[...]
    if activation == "relu":
        y = jnp.maximum(y, 0.0)
    elif activation == "sigmoid":
        # exp -> EUP, approx reciprocal -> EUP: keeps the epilogue off the VALU path.
        y = pl.reciprocal(1.0 + jnp.exp(-y), approx=True)

    if not compute_stats:
        h_ref[...] = y.astype(h_ref.dtype)
        return

    @pl.when(i == 0)
    def _():
        sum_sc[...] = jnp.zeros_like(sum_sc)
        sq_sc[...] = jnp.zeros_like(sq_sc)

    def store_and_accumulate(yv):
        h_ref[...] = yv.astype(h_ref.dtype)
        sum_sc[...] += jnp.sum(yv, axis=0, keepdims=True)
        sq_sc[...] += jnp.sum(yv * yv, axis=0, keepdims=True)

    if masked:
        # Only the last tile holds padded batch rows -> zero them there (they would
        # otherwise contribute relu(bias) to the statistics).
        @pl.when(i == nb - 1)
        def _():
            rows = jax.lax.broadcasted_iota(jnp.int32, y.shape, 0)
            store_and_accumulate(jnp.where(rows < rows_valid_last, y, 0.0))

        @pl.when(i != nb - 1)
        def _():
            store_and_accumulate(y)
    else:
        store_and_accumulate(y)

    @pl.when(i == nb - 1)
    def _():
        inv_b = jnp.float32(1.0 / b_true)
        mean = sum_sc[...] * inv_b
        # Single-pass biased variance; clamp tiny negative values from cancellation.
        var = jnp.maximum(sq_sc[...] * inv_b - mean * mean, 0.0)
        scale = g_ref[...] * jax.lax.rsqrt(var + jnp.float32(EPS))
        scale_out_ref[...] = scale
        shift_out_ref[...] = be_ref[...] - mean * scale


# --------------------------- pallas_call wrapper ---------------------------- #

def _round_up(n, m):
    return (n + m - 1) // m * m


def _linear_layer(x, w, b, *, tb, activation, b_true, affine=None, bn=None):
    """One fused linear(+activation)(+BN-stats) pallas_call over batch tiles."""
    bp, k = x.shape
    n = w.shape[1]
    nb = bp // tb
    apply_affine = affine is not None
    compute_stats = bn is not None

    inputs = [x]
    in_specs = [pl.BlockSpec((tb, k), lambda i: (i, 0))]          # x tile
    if apply_affine:
        inputs += list(affine)
        in_specs += [pl.BlockSpec((1, k), lambda i: (0, 0)),      # fused BN scale
                     pl.BlockSpec((1, k), lambda i: (0, 0))]      # fused BN shift
    inputs += [w, b]
    in_specs += [pl.BlockSpec((k, n), lambda i: (0, 0)),          # weights (resident)
                 pl.BlockSpec((1, n), lambda i: (0, 0))]          # bias
    if compute_stats:
        inputs += list(bn)
        in_specs += [pl.BlockSpec((1, n), lambda i: (0, 0)),      # gamma
                     pl.BlockSpec((1, n), lambda i: (0, 0))]      # beta

    h_spec = pl.BlockSpec((tb, n), lambda i: (i, 0))
    h_shape = jax.ShapeDtypeStruct((bp, n), jnp.float32)
    if compute_stats:
        vec_spec = pl.BlockSpec((1, n), lambda i: (0, 0))
        vec_shape = jax.ShapeDtypeStruct((1, n), jnp.float32)
        out_shape = (h_shape, vec_shape, vec_shape)
        out_specs = (h_spec, vec_spec, vec_spec)
        scratch_shapes = [pltpu.VMEM((1, n), jnp.float32),        # running sum
                          pltpu.VMEM((1, n), jnp.float32)]        # running sum of squares
        semantics = ("arbitrary",)    # accumulator carries across batch tiles
    else:
        out_shape = h_shape
        out_specs = h_spec
        scratch_shapes = []
        semantics = ("parallel",)     # no cross-tile state -> megacore-shardable

    masked = compute_stats and (bp != b_true)
    rows_valid_last = b_true - (nb - 1) * tb

    kernel = functools.partial(
        _linear_kernel, activation=activation, apply_affine=apply_affine,
        compute_stats=compute_stats, b_true=b_true,
        rows_valid_last=rows_valid_last, masked=masked)

    flops = 2 * bp * k * n + (4 * bp * n if compute_stats else 0)
    transcendentals = (2 * bp * n if activation == "sigmoid" else 0) \
        + (n if compute_stats else 0)
    bytes_accessed = (4 * bp * k + w.dtype.itemsize * k * n + 4 * n
                      + (8 * k if apply_affine else 0)
                      + (8 * n if compute_stats else 0)
                      + 4 * bp * n
                      + (8 * n if compute_stats else 0))

    return pl.pallas_call(
        kernel,
        out_shape=out_shape,
        grid_spec=pltpu.PrefetchScalarGridSpec(
            num_scalar_prefetch=0,
            grid=(nb,),
            in_specs=in_specs,
            out_specs=out_specs,
            scratch_shapes=scratch_shapes),
        compiler_params=pltpu.CompilerParams(dimension_semantics=semantics),
        cost_estimate=pl.CostEstimate(flops=flops,
                                      transcendentals=transcendentals,
                                      bytes_accessed=bytes_accessed),
    )(*inputs)


# ------------------------------- forward ----------------------------------- #

def prepare_params(params):
    """One-time prep OUTSIDE the jitted forward: cast weights to bf16 for the MXU and
    pad the final layer to a lane-dense 128-wide output (sliced back after the call)."""
    (w1, b1, g1, be1, w2, b2, g2, be2, w3, b3) = params
    out_size = w3.shape[1]
    out_pad = _round_up(out_size, 128)
    w3p = jnp.pad(w3, ((0, 0), (0, out_pad - out_size)))
    b3p = jnp.pad(b3, ((0, 0), (0, out_pad - out_size)))
    prepared = (w1.astype(jnp.bfloat16), b1, g1, be1,
                w2.astype(jnp.bfloat16), b2, g2, be2,
                w3p.astype(jnp.bfloat16), b3p)
    return prepared, out_size


@functools.partial(jax.jit, static_argnames=("out_size",))
def lotto_forward(x, params, *, out_size):
    (w1, b1, g1, be1, w2, b2, g2, be2, w3, b3) = params
    b_true = x.shape[0]

    # tb=128: parallel final layer gets >=2 tiles per v7x TensorCore at moderate batch,
    # less batch padding than 256, and per-tile VMEM stays trivial on all generations.
    tb = 128 if b_true >= 128 else _round_up(b_true, 8)
    b_pad = _round_up(b_true, tb)

    x_p = x.astype(jnp.float32)
    if b_pad != b_true:
        x_p = jnp.pad(x_p, ((0, b_pad - b_true), (0, 0)))

    # Layer 1: Linear(in,1024)+ReLU with fused BN1 statistics (no-affine fast path).
    h1, s1, t1 = _linear_layer(x_p, w1, b1, tb=tb, activation="relu",
                               b_true=b_true, bn=(g1, be1))
    # Layer 2: BN1 affine + Linear(1024,256)+ReLU with fused BN2 statistics.
    h2, s2, t2 = _linear_layer(h1, w2, b2, tb=tb, activation="relu",
                               b_true=b_true, affine=(s1, t1), bn=(g2, be2))
    # Layer 3: BN2 affine + Linear(256,out_pad)+Sigmoid (lane-dense padded output).
    out = _linear_layer(h2, w3, b3, tb=tb, activation="sigmoid",
                        b_true=b_true, affine=(s2, t2))
    return out[:b_true, :out_size]


# ------------------------------ reference ----------------------------------- #

def init_params(key, in_size, out_size):
    """Deterministic synthetic parameter init (PyTorch-like, (in, out) weight layout)."""
    k = jax.random.split(key, 6)

    def lin(kw, kb, fan_in, fan_out):
        bound = 1.0 / jnp.sqrt(jnp.float32(fan_in))
        w = jax.random.uniform(kw, (fan_in, fan_out), jnp.float32, -bound, bound)
        b = jax.random.uniform(kb, (1, fan_out), jnp.float32, -bound, bound)
        return w, b

    w1, b1 = lin(k[0], k[1], in_size, 1024)
    w2, b2 = lin(k[2], k[3], 1024, 256)
    w3, b3 = lin(k[4], k[5], 256, out_size)

    g1 = jnp.ones((1, 1024), jnp.float32)
    be1 = jnp.zeros((1, 1024), jnp.float32)
    g2 = jnp.ones((1, 256), jnp.float32)
    be2 = jnp.zeros((1, 256), jnp.float32)

    return (w1, b1, g1, be1, w2, b2, g2, be2, w3, b3)


def reference_forward(x, params):
    (w1, b1, g1, be1, w2, b2, g2, be2, w3, b3) = params

    def bn(h, g, b):
        m = jnp.mean(h, axis=0, keepdims=True)
        v = jnp.mean((h - m) ** 2, axis=0, keepdims=True)   # biased (training-mode) var
        return g * (h - m) / jnp.sqrt(v + EPS) + b

    h = jnp.maximum(x @ w1 + b1, 0.0)
    h = bn(h, g1, be1)
    h = jnp.maximum(h @ w2 + b2, 0.0)
    h = bn(h, g2, be2)
    return jax.nn.sigmoid(h @ w3 + b3)


if __name__ == "__main__":
    key = jax.random.PRNGKey(0)
    in_size, out_size = 16, 8

    # batch=8: single small tile (nb=1, no padding).
    # batch=300: multi-tile path (tb=128, padded to 384) exercising cross-tile BN stats
    # and padded-row zeroing on the last tile.
    for batch in (8, 300):
        kx, kp = jax.random.split(jax.random.fold_in(key, batch))
        x = jax.random.normal(kx, (batch, in_size), jnp.float32)
        params = init_params(kp, in_size, out_size)
        prepared, osize = prepare_params(params)

        out = jax.block_until_ready(lotto_forward(x, prepared, out_size=osize))
        ref = reference_forward(x, params)

        assert out.shape == (batch, out_size)
        err = float(jnp.max(jnp.abs(out - ref)))
        # bf16 MXU operands (f32 accumulation) vs. pure-f32 reference -> relaxed tolerance
        assert err < 5e-2, f"batch={batch}: max abs err {err}"

    print("KERNEL_OK")
</pallas_src>

<mosaic_0001>
module attributes {stable_mosaic.version = 11 : i64} {
  func.func @_linear_kernel(%arg0: i32, %arg1: memref<8x16xf32, #tpu.memory_space<vmem>>, %arg2: memref<16x1024xbf16, #tpu.memory_space<vmem>>, %arg3: memref<1x1024xf32, #tpu.memory_space<vmem>>, %arg4: memref<1x1024xf32, #tpu.memory_space<vmem>>, %arg5: memref<1x1024xf32, #tpu.memory_space<vmem>>, %arg6: memref<8x1024xf32, #tpu.memory_space<vmem>>, %arg7: memref<1x1024xf32, #tpu.memory_space<vmem>>, %arg8: memref<1x1024xf32, #tpu.memory_space<vmem>>, %arg9: memref<1x1024xf32, #tpu.memory_space<vmem>>, %arg10: memref<1x1024xf32, #tpu.memory_space<vmem>>) attributes {dimension_semantics = [#tpu.dimension_semantics<arbitrary>], iteration_bounds = array<i64: 1>, scalar_prefetch = 0 : i64, scratch_operands = 2 : i64, tpu.core_type = #tpu.core_type<tc>, window_params = [{transform_indices = @transform_0, window_bounds = array<i64: 8, 16>}, {pipeline_mode = #tpu.pipeline_mode<synchronous>, transform_indices = @transform_1, window_bounds = array<i64: 16, 1024>}, {pipeline_mode = #tpu.pipeline_mode<synchronous>, transform_indices = @transform_2, window_bounds = array<i64: 1, 1024>}, {pipeline_mode = #tpu.pipeline_mode<synchronous>, transform_indices = @transform_3, window_bounds = array<i64: 1, 1024>}, {pipeline_mode = #tpu.pipeline_mode<synchronous>, transform_indices = @transform_4, window_bounds = array<i64: 1, 1024>}, {transform_indices = @transform_5, window_bounds = array<i64: 8, 1024>}, {pipeline_mode = #tpu.pipeline_mode<synchronous>, transform_indices = @transform_6, window_bounds = array<i64: 1, 1024>}, {pipeline_mode = #tpu.pipeline_mode<synchronous>, transform_indices = @transform_7, window_bounds = array<i64: 1, 1024>}]} {
    %c0 = arith.constant 0 : index
    %c0_0 = arith.constant 0 : index
    %0 = vector.load %arg1[%c0, %c0_0] : memref<8x16xf32, #tpu.memory_space<vmem>>, vector<8x16xf32>
    %1 = arith.truncf %0 : vector<8x16xf32> to vector<8x16xbf16>
    %c0_1 = arith.constant 0 : index
    %c0_2 = arith.constant 0 : index
    %2 = vector.load %arg2[%c0_1, %c0_2] : memref<16x1024xbf16, #tpu.memory_space<vmem>>, vector<16x1024xbf16>
    %cst = arith.constant dense<0.000000e+00> : vector<8x1024xf32>
    %3 = tpu.matmul %1, %2, %cst {dimension_numbers = #tpu.dot_dimension_numbers<[1], [0], [0], [1], [0, 0, 1, 1], [], []>} : vector<8x16xbf16>, vector<16x1024xbf16>, vector<8x1024xf32> -> vector<8x1024xf32>
    %c0_3 = arith.constant 0 : index
    %c0_4 = arith.constant 0 : index
    %4 = vector.load %arg3[%c0_3, %c0_4] : memref<1x1024xf32, #tpu.memory_space<vmem>>, vector<1x1024xf32>
    %5 = vector.broadcast %4 : vector<1x1024xf32> to vector<8x1024xf32>
    %6 = arith.addf %3, %5 : vector<8x1024xf32>
    %cst_5 = arith.constant 0.000000e+00 : f32
    %7 = vector.broadcast %cst_5 : f32 to vector<8x1024xf32>
    %8 = arith.maximumf %6, %7 : vector<8x1024xf32>
    %c0_i32 = arith.constant 0 : i32
    %9 = arith.cmpi eq, %arg0, %c0_i32 : i32
    %10 = arith.extui %9 : i1 to i32
    %c0_i32_6 = arith.constant 0 : i32
    %11 = arith.cmpi ne, %10, %c0_i32_6 : i32
    scf.if %11 {
      %cst_21 = arith.constant 0.000000e+00 : f32
      %27 = vector.broadcast %cst_21 : f32 to vector<1x1024xf32>
      %c0_22 = arith.constant 0 : index
      %c0_23 = arith.constant 0 : index
      %28 = vector.load %arg9[%c0_22, %c0_23] : memref<1x1024xf32, #tpu.memory_space<vmem>>, vector<1x1024xf32>
      tpu.vector_store %arg9[%c0_22, %c0_23], %27 {strides = array<i32>} : memref<1x1024xf32, #tpu.memory_space<vmem>>, vector<1x1024xf32>,
      %cst_24 = arith.constant 0.000000e+00 : f32
      %29 = vector.broadcast %cst_24 : f32 to vector<1x1024xf32>
      %c0_25 = arith.constant 0 : index
      %c0_26 = arith.constant 0 : index
      %30 = vector.load %arg10[%c0_25, %c0_26] : memref<1x1024xf32, #tpu.memory_space<vmem>>, vector<1x1024xf32>
      tpu.vector_store %arg10[%c0_25, %c0_26], %29 {strides = array<i32>} : memref<1x1024xf32, #tpu.memory_space<vmem>>, vector<1x1024xf32>,
    } else {
    }
    %c0_7 = arith.constant 0 : index
    %c0_8 = arith.constant 0 : index
    %12 = vector.load %arg6[%c0_7, %c0_8] : memref<8x1024xf32, #tpu.memory_space<vmem>>, vector<8x1024xf32>
    tpu.vector_store %arg6[%c0_7, %c0_8], %8 {strides = array<i32>} : memref<8x1024xf32, #tpu.memory_space<vmem>>, vector<8x1024xf32>,
    %c0_9 = arith.constant 0 : index
    %c0_10 = arith.constant 0 : index
    %13 = vector.load %arg9[%c0_9, %c0_10] : memref<1x1024xf32, #tpu.memory_space<vmem>>, vector<1x1024xf32>
    %cst_11 = arith.constant dense<0.000000e+00> : vector<1024xf32>
    %14 = vector.multi_reduction <add>, %8, %cst_11 [0] : vector<8x1024xf32> to vector<1024xf32>
    %15 = vector.shape_cast %14 : vector<1024xf32> to vector<1x1024xf32>
    %16 = arith.addf %13, %15 : vector<1x1024xf32>
    %c0_12 = arith.constant 0 : index
    %c0_13 = arith.constant 0 : index
    %17 = vector.load %arg9[%c0_12, %c0_13] : memref<1x1024xf32, #tpu.memory_space<vmem>>, vector<1x1024xf32>
    tpu.vector_store %arg9[%c0_12, %c0_13], %16 {strides = array<i32>} : memref<1x1024xf32, #tpu.memory_space<vmem>>, vector<1x1024xf32>,
    %c0_14 = arith.constant 0 : index
    %c0_15 = arith.constant 0 : index
    %18 = vector.load %arg10[%c0_14, %c0_15] : memref<1x1024xf32, #tpu.memory_space<vmem>>, vector<1x1024xf32>
    %19 = arith.mulf %8, %8 : vector<8x1024xf32>
    %cst_16 = arith.constant dense<0.000000e+00> : vector<1024xf32>
    %20 = vector.multi_reduction <add>, %19, %cst_16 [0] : vector<8x1024xf32> to vector<1024xf32>
    %21 = vector.shape_cast %20 : vector<1024xf32> to vector<1x1024xf32>
    %22 = arith.addf %18, %21 : vector<1x1024xf32>
    %c0_17 = arith.constant 0 : index
    %c0_18 = arith.constant 0 : index
    %23 = vector.load %arg10[%c0_17, %c0_18] : memref<1x1024xf32, #tpu.memory_space<vmem>>, vector<1x1024xf32>
    tpu.vector_store %arg10[%c0_17, %c0_18], %22 {strides = array<i32>} : memref<1x1024xf32, #tpu.memory_space<vmem>>, vector<1x1024xf32>,
    %c0_i32_19 = arith.constant 0 : i32
    %24 = arith.cmpi eq, %arg0, %c0_i32_19 : i32
    %25 = arith.extui %24 : i1 to i32
    %c0_i32_20 = arith.constant 0 : i32
    %26 = arith.cmpi ne, %25, %c0_i32_20 : i32
    scf.if %26 {
      %c0_21 = arith.constant 0 : index
      %c0_22 = arith.constant 0 : index
      %27 = vector.load %arg9[%c0_21, %c0_22] : memref<1x1024xf32, #tpu.memory_space<vmem>>, vector<1x1024xf32>
      %cst_23 = arith.constant 1.250000e-01 : f32
      %28 = vector.broadcast %cst_23 : f32 to vector<1x1024xf32>
      %29 = arith.mulf %27, %28 : vector<1x1024xf32>
      %c0_24 = arith.constant 0 : index
      %c0_25 = arith.constant 0 : index
      %30 = vector.load %arg10[%c0_24, %c0_25] : memref<1x1024xf32, #tpu.memory_space<vmem>>, vector<1x1024xf32>
      %cst_26 = arith.constant 1.250000e-01 : f32
      %31 = vector.broadcast %cst_26 : f32 to vector<1x1024xf32>
      %32 = arith.mulf %30, %31 : vector<1x1024xf32>
      %33 = arith.mulf %29, %29 : vector<1x1024xf32>
      %34 = arith.subf %32, %33 : vector<1x1024xf32>
      %cst_27 = arith.constant 0.000000e+00 : f32
      %35 = vector.broadcast %cst_27 : f32 to vector<1x1024xf32>
      %36 = arith.maximumf %34, %35 : vector<1x1024xf32>
      %c0_28 = arith.constant 0 : index
      %c0_29 = arith.constant 0 : index
      %37 = vector.load %arg4[%c0_28, %c0_29] : memref<1x1024xf32, #tpu.memory_space<vmem>>, vector<1x1024xf32>
      %cst_30 = arith.constant 9.99999974E-6 : f32
      %38 = vector.broadcast %cst_30 : f32 to vector<1x1024xf32>
      %39 = arith.addf %36, %38 : vector<1x1024xf32>
      %40 = math.rsqrt %39 : vector<1x1024xf32>
      %41 = arith.mulf %37, %40 : vector<1x1024xf32>
      %c0_31 = arith.constant 0 : index
      %c0_32 = arith.constant 0 : index
      %42 = vector.load %arg7[%c0_31, %c0_32] : memref<1x1024xf32, #tpu.memory_space<vmem>>, vector<1x1024xf32>
      tpu.vector_store %arg7[%c0_31, %c0_32], %41 {strides = array<i32>} : memref<1x1024xf32, #tpu.memory_space<vmem>>, vector<1x1024xf32>,
      %c0_33 = arith.constant 0 : index
      %c0_34 = arith.constant 0 : index
      %43 = vector.load %arg5[%c0_33, %c0_34] : memref<1x1024xf32, #tpu.memory_space<vmem>>, vector<1x1024xf32>
      %44 = arith.mulf %29, %41 : vector<1x1024xf32>
      %45 = arith.subf %43, %44 : vector<1x1024xf32>
      %c0_35 = arith.constant 0 : index
      %c0_36 = arith.constant 0 : index
      %46 = vector.load %arg8[%c0_35, %c0_36] : memref<1x1024xf32, #tpu.memory_space<vmem>>, vector<1x1024xf32>
      tpu.vector_store %arg8[%c0_35, %c0_36], %45 {strides = array<i32>} : memref<1x1024xf32, #tpu.memory_space<vmem>>, vector<1x1024xf32>,
    } else {
    }
    return
  }
  func.func @transform_0(%arg0: i32) -> (i32, i32) {
    %c0_i32 = arith.constant 0 : i32
    %c0_i32_0 = arith.constant 0 : i32
    return %arg0, %c0_i32 : i32, i32
  }
  func.func @transform_1(%arg0: i32) -> (i32, i32) {
    %c0_i32 = arith.constant 0 : i32
    %c0_i32_0 = arith.constant 0 : i32
    %c0_i32_1 = arith.constant 0 : i32
    return %c0_i32, %c0_i32_0 : i32, i32
  }
  func.func @transform_2(%arg0: i32) -> (i32, i32) {
    %c0_i32 = arith.constant 0 : i32
    %c0_i32_0 = arith.constant 0 : i32
    %c0_i32_1 = arith.constant 0 : i32
    return %c0_i32, %c0_i32_0 : i32, i32
  }
  func.func @transform_3(%arg0: i32) -> (i32, i32) {
    %c0_i32 = arith.constant 0 : i32
    %c0_i32_0 = arith.constant 0 : i32
    %c0_i32_1 = arith.constant 0 : i32
    return %c0_i32, %c0_i32_0 : i32, i32
  }
  func.func @transform_4(%arg0: i32) -> (i32, i32) {
    %c0_i32 = arith.constant 0 : i32
    %c0_i32_0 = arith.constant 0 : i32
    %c0_i32_1 = arith.constant 0 : i32
    return %c0_i32, %c0_i32_0 : i32, i32
  }
  func.func @transform_5(%arg0: i32) -> (i32, i32) {
    %c0_i32 = arith.constant 0 : i32
    %c0_i32_0 = arith.constant 0 : i32
    return %arg0, %c0_i32 : i32, i32
  }
  func.func @transform_6(%arg0: i32) -> (i32, i32) {
    %c0_i32 = arith.constant 0 : i32
    %c0_i32_0 = arith.constant 0 : i32
    %c0_i32_1 = arith.constant 0 : i32
    return %c0_i32, %c0_i32_0 : i32, i32
  }
  func.func @transform_7(%arg0: i32) -> (i32, i32) {
    %c0_i32 = arith.constant 0 : i32
    %c0_i32_0 = arith.constant 0 : i32
    %c0_i32_1 = arith.constant 0 : i32
    return %c0_i32, %c0_i32_0 : i32, i32
  }
}

module attributes {stable_mosaic.version = 11 : i64} {
  func.func @_linear_kernel(%arg0: i32, %arg1: memref<8x256xf32, #tpu.memory_space<vmem>>, %arg2: memref<1x256xf32, #tpu.memory_space<vmem>>, %arg3: memref<1x256xf32, #tpu.memory_space<vmem>>, %arg4: memref<256x128xbf16, #tpu.memory_space<vmem>>, %arg5: memref<1x128xf32, #tpu.memory_space<vmem>>, %arg6: memref<8x128xf32, #tpu.memory_space<vmem>>) attributes {dimension_semantics = [#tpu.dimension_semantics<parallel>], iteration_bounds = array<i64: 1>, scalar_prefetch = 0 : i64, scratch_operands = 0 : i64, tpu.core_type = #tpu.core_type<tc>, window_params = [{transform_indices = @transform_0, window_bounds = array<i64: 8, 256>}, {pipeline_mode = #tpu.pipeline_mode<synchronous>, transform_indices = @transform_1, window_bounds = array<i64: 1, 256>}, {pipeline_mode = #tpu.pipeline_mode<synchronous>, transform_indices = @transform_2, window_bounds = array<i64: 1, 256>}, {pipeline_mode = #tpu.pipeline_mode<synchronous>, transform_indices = @transform_3, window_bounds = array<i64: 256, 128>}, {pipeline_mode = #tpu.pipeline_mode<synchronous>, transform_indices = @transform_4, window_bounds = array<i64: 1, 128>}, {transform_indices = @transform_5, window_bounds = array<i64: 8, 128>}]} {
    %c0 = arith.constant 0 : index
    %c0_0 = arith.constant 0 : index
    %0 = vector.load %arg1[%c0, %c0_0] : memref<8x256xf32, #tpu.memory_space<vmem>>, vector<8x256xf32>
    %c0_1 = arith.constant 0 : index
    %c0_2 = arith.constant 0 : index
    %1 = vector.load %arg2[%c0_1, %c0_2] : memref<1x256xf32, #tpu.memory_space<vmem>>, vector<1x256xf32>
    %2 = vector.broadcast %1 : vector<1x256xf32> to vector<8x256xf32>
    %3 = arith.mulf %0, %2 : vector<8x256xf32>
    %c0_3 = arith.constant 0 : index
    %c0_4 = arith.constant 0 : index
    %4 = vector.load %arg3[%c0_3, %c0_4] : memref<1x256xf32, #tpu.memory_space<vmem>>, vector<1x256xf32>
    %5 = vector.broadcast %4 : vector<1x256xf32> to vector<8x256xf32>
    %6 = arith.addf %3, %5 : vector<8x256xf32>
    %7 = arith.truncf %6 : vector<8x256xf32> to vector<8x256xbf16>
    %c0_5 = arith.constant 0 : index
    %c0_6 = arith.constant 0 : index
    %8 = vector.load %arg4[%c0_5, %c0_6] : memref<256x128xbf16, #tpu.memory_space<vmem>>, vector<256x128xbf16>
    %cst = arith.constant dense<0.000000e+00> : vector<8x128xf32>
    %9 = tpu.matmul %7, %8, %cst {dimension_numbers = #tpu.dot_dimension_numbers<[1], [0], [0], [1], [0, 0, 1, 1], [], []>} : vector<8x256xbf16>, vector<256x128xbf16>, vector<8x128xf32> -> vector<8x128xf32>
    %c0_7 = arith.constant 0 : index
    %c0_8 = arith.constant 0 : index
    %10 = vector.load %arg5[%c0_7, %c0_8] : memref<1x128xf32, #tpu.memory_space<vmem>>, vector<1x128xf32>
    %11 = vector.broadcast %10 : vector<1x128xf32> to vector<8x128xf32>
    %12 = arith.addf %9, %11 : vector<8x128xf32>
    %cst_9 = arith.constant 0.000000e+00 : f32
    %13 = vector.broadcast %cst_9 : f32 to vector<8x128xf32>
    %14 = arith.subf %13, %12 : vector<8x128xf32>
    %15 = math.exp %14 : vector<8x128xf32>
    %cst_10 = arith.constant 1.000000e+00 : f32
    %16 = vector.broadcast %cst_10 : f32 to vector<8x128xf32>
    %17 = arith.addf %16, %15 : vector<8x128xf32>
    %18 = tpu.reciprocal %17 {approx = true} : vector<8x128xf32> -> vector<8x128xf32>
    %c0_11 = arith.constant 0 : index
    %c0_12 = arith.constant 0 : index
    %19 = vector.load %arg6[%c0_11, %c0_12] : memref<8x128xf32, #tpu.memory_space<vmem>>, vector<8x128xf32>
    tpu.vector_store %arg6[%c0_11, %c0_12], %18 {strides = array<i32>} : memref<8x128xf32, #tpu.memory_space<vmem>>, vector<8x128xf32>,
    return
  }
  func.func @transform_0(%arg0: i32) -> (i32, i32) {
    %c0_i32 = arith.constant 0 : i32
    %c0_i32_0 = arith.constant 0 : i32
    return %arg0, %c0_i32 : i32, i32
  }
  func.func @transform_1(%arg0: i32) -> (i32, i32) {
    %c0_i32 = arith.constant 0 : i32
    %c0_i32_0 = arith.constant 0 : i32
    %c0_i32_1 = arith.constant 0 : i32
    return %c0_i32, %c0_i32_0 : i32, i32
  }
  func.func @transform_2(%arg0: i32) -> (i32, i32) {
    %c0_i32 = arith.constant 0 : i32
    %c0_i32_0 = arith.constant 0 : i32
    %c0_i32_1 = arith.constant 0 : i32
    return %c0_i32, %c0_i32_0 : i32, i32
  }
  func.func @transform_3(%arg0: i32) -> (i32, i32) {
    %c0_i32 = arith.constant 0 : i32
    %c0_i32_0 = arith.constant 0 : i32
    %c0_i32_1 = arith.constant 0 : i32
    return %c0_i32, %c0_i32_0 : i32, i32
  }
  func.func @transform_4(%arg0: i32) -> (i32, i32) {
    %c0_i32 = arith.constant 0 : i32
    %c0_i32_0 = arith.constant 0 : i32
    %c0_i32_1 = arith.constant 0 : i32
    return %c0_i32, %c0_i32_0 : i32, i32
  }
  func.func @transform_5(%arg0: i32) -> (i32, i32) {
    %c0_i32 = arith.constant 0 : i32
    %c0_i32_0 = arith.constant 0 : i32
    return %arg0, %c0_i32 : i32, i32
  }
}

module attributes {stable_mosaic.version = 11 : i64} {
  func.func @_linear_kernel(%arg0: i32, %arg1: memref<8x1024xf32, #tpu.memory_space<vmem>>, %arg2: memref<1x1024xf32, #tpu.memory_space<vmem>>, %arg3: memref<1x1024xf32, #tpu.memory_space<vmem>>, %arg4: memref<1024x256xbf16, #tpu.memory_space<vmem>>, %arg5: memref<1x256xf32, #tpu.memory_space<vmem>>, %arg6: memref<1x256xf32, #tpu.memory_space<vmem>>, %arg7: memref<1x256xf32, #tpu.memory_space<vmem>>, %arg8: memref<8x256xf32, #tpu.memory_space<vmem>>, %arg9: memref<1x256xf32, #tpu.memory_space<vmem>>, %arg10: memref<1x256xf32, #tpu.memory_space<vmem>>, %arg11: memref<1x256xf32, #tpu.memory_space<vmem>>, %arg12: memref<1x256xf32, #tpu.memory_space<vmem>>) attributes {dimension_semantics = [#tpu.dimension_semantics<arbitrary>], iteration_bounds = array<i64: 1>, scalar_prefetch = 0 : i64, scratch_operands = 2 : i64, tpu.core_type = #tpu.core_type<tc>, window_params = [{transform_indices = @transform_0, window_bounds = array<i64: 8, 1024>}, {pipeline_mode = #tpu.pipeline_mode<synchronous>, transform_indices = @transform_1, window_bounds = array<i64: 1, 1024>}, {pipeline_mode = #tpu.pipeline_mode<synchronous>, transform_indices = @transform_2, window_bounds = array<i64: 1, 1024>}, {pipeline_mode = #tpu.pipeline_mode<synchronous>, transform_indices = @transform_3, window_bounds = array<i64: 1024, 256>}, {pipeline_mode = #tpu.pipeline_mode<synchronous>, transform_indices = @transform_4, window_bounds = array<i64: 1, 256>}, {pipeline_mode = #tpu.pipeline_mode<synchronous>, transform_indices = @transform_5, window_bounds = array<i64: 1, 256>}, {pipeline_mode = #tpu.pipeline_mode<synchronous>, transform_indices = @transform_6, window_bounds = array<i64: 1, 256>}, {transform_indices = @transform_7, window_bounds = array<i64: 8, 256>}, {pipeline_mode = #tpu.pipeline_mode<synchronous>, transform_indices = @transform_8, window_bounds = array<i64: 1, 256>}, {pipeline_mode = #tpu.pipeline_mode<synchronous>, transform_indices = @transform_9, window_bounds = array<i64: 1, 256>}]} {
    %c0 = arith.constant 0 : index
    %c0_0 = arith.constant 0 : index
    %0 = vector.load %arg1[%c0, %c0_0] : memref<8x1024xf32, #tpu.memory_space<vmem>>, vector<8x1024xf32>
    %c0_1 = arith.constant 0 : index
    %c0_2 = arith.constant 0 : index
    %1 = vector.load %arg2[%c0_1, %c0_2] : memref<1x1024xf32, #tpu.memory_space<vmem>>, vector<1x1024xf32>
    %2 = vector.broadcast %1 : vector<1x1024xf32> to vector<8x1024xf32>
    %3 = arith.mulf %0, %2 : vector<8x1024xf32>
    %c0_3 = arith.constant 0 : index
    %c0_4 = arith.constant 0 : index
    %4 = vector.load %arg3[%c0_3, %c0_4] : memref<1x1024xf32, #tpu.memory_space<vmem>>, vector<1x1024xf32>
    %5 = vector.broadcast %4 : vector<1x1024xf32> to vector<8x1024xf32>
    %6 = arith.addf %3, %5 : vector<8x1024xf32>
    %7 = arith.truncf %6 : vector<8x1024xf32> to vector<8x1024xbf16>
    %c0_5 = arith.constant 0 : index
    %c0_6 = arith.constant 0 : index
    %8 = vector.load %arg4[%c0_5, %c0_6] : memref<1024x256xbf16, #tpu.memory_space<vmem>>, vector<1024x256xbf16>
    %cst = arith.constant dense<0.000000e+00> : vector<8x256xf32>
    %9 = tpu.matmul %7, %8, %cst {dimension_numbers = #tpu.dot_dimension_numbers<[1], [0], [0], [1], [0, 0, 1, 1], [], []>} : vector<8x1024xbf16>, vector<1024x256xbf16>, vector<8x256xf32> -> vector<8x256xf32>
    %c0_7 = arith.constant 0 : index
    %c0_8 = arith.constant 0 : index
    %10 = vector.load %arg5[%c0_7, %c0_8] : memref<1x256xf32, #tpu.memory_space<vmem>>, vector<1x256xf32>
    %11 = vector.broadcast %10 : vector<1x256xf32> to vector<8x256xf32>
    %12 = arith.addf %9, %11 : vector<8x256xf32>
    %cst_9 = arith.constant 0.000000e+00 : f32
    %13 = vector.broadcast %cst_9 : f32 to vector<8x256xf32>
    %14 = arith.maximumf %12, %13 : vector<8x256xf32>
    %c0_i32 = arith.constant 0 : i32
    %15 = arith.cmpi eq, %arg0, %c0_i32 : i32
    %16 = arith.extui %15 : i1 to i32
    %c0_i32_10 = arith.constant 0 : i32
    %17 = arith.cmpi ne, %16, %c0_i32_10 : i32
    scf.if %17 {
      %cst_25 = arith.constant 0.000000e+00 : f32
      %33 = vector.broadcast %cst_25 : f32 to vector<1x256xf32>
      %c0_26 = arith.constant 0 : index
      %c0_27 = arith.constant 0 : index
      %34 = vector.load %arg11[%c0_26, %c0_27] : memref<1x256xf32, #tpu.memory_space<vmem>>, vector<1x256xf32>
      tpu.vector_store %arg11[%c0_26, %c0_27], %33 {strides = array<i32>} : memref<1x256xf32, #tpu.memory_space<vmem>>, vector<1x256xf32>,
      %cst_28 = arith.constant 0.000000e+00 : f32
      %35 = vector.broadcast %cst_28 : f32 to vector<1x256xf32>
      %c0_29 = arith.constant 0 : index
      %c0_30 = arith.constant 0 : index
      %36 = vector.load %arg12[%c0_29, %c0_30] : memref<1x256xf32, #tpu.memory_space<vmem>>, vector<1x256xf32>
      tpu.vector_store %arg12[%c0_29, %c0_30], %35 {strides = array<i32>} : memref<1x256xf32, #tpu.memory_space<vmem>>, vector<1x256xf32>,
    } else {
    }
    %c0_11 = arith.constant 0 : index
    %c0_12 = arith.constant 0 : index
    %18 = vector.load %arg8[%c0_11, %c0_12] : memref<8x256xf32, #tpu.memory_space<vmem>>, vector<8x256xf32>
    tpu.vector_store %arg8[%c0_11, %c0_12], %14 {strides = array<i32>} : memref<8x256xf32, #tpu.memory_space<vmem>>, vector<8x256xf32>,
    %c0_13 = arith.constant 0 : index
    %c0_14 = arith.constant 0 : index
    %19 = vector.load %arg11[%c0_13, %c0_14] : memref<1x256xf32, #tpu.memory_space<vmem>>, vector<1x256xf32>
    %cst_15 = arith.constant dense<0.000000e+00> : vector<256xf32>
    %20 = vector.multi_reduction <add>, %14, %cst_15 [0] : vector<8x256xf32> to vector<256xf32>
    %21 = vector.shape_cast %20 : vector<256xf32> to vector<1x256xf32>
    %22 = arith.addf %19, %21 : vector<1x256xf32>
    %c0_16 = arith.constant 0 : index
    %c0_17 = arith.constant 0 : index
    %23 = vector.load %arg11[%c0_16, %c0_17] : memref<1x256xf32, #tpu.memory_space<vmem>>, vector<1x256xf32>
    tpu.vector_store %arg11[%c0_16, %c0_17], %22 {strides = array<i32>} : memref<1x256xf32, #tpu.memory_space<vmem>>, vector<1x256xf32>,
    %c0_18 = arith.constant 0 : index
    %c0_19 = arith.constant 0 : index
    %24 = vector.load %arg12[%c0_18, %c0_19] : memref<1x256xf32, #tpu.memory_space<vmem>>, vector<1x256xf32>
    %25 = arith.mulf %14, %14 : vector<8x256xf32>
    %cst_20 = arith.constant dense<0.000000e+00> : vector<256xf32>
    %26 = vector.multi_reduction <add>, %25, %cst_20 [0] : vector<8x256xf32> to vector<256xf32>
    %27 = vector.shape_cast %26 : vector<256xf32> to vector<1x256xf32>
    %28 = arith.addf %24, %27 : vector<1x256xf32>
    %c0_21 = arith.constant 0 : index
    %c0_22 = arith.constant 0 : index
    %29 = vector.load %arg12[%c0_21, %c0_22] : memref<1x256xf32, #tpu.memory_space<vmem>>, vector<1x256xf32>
    tpu.vector_store %arg12[%c0_21, %c0_22], %28 {strides = array<i32>} : memref<1x256xf32, #tpu.memory_space<vmem>>, vector<1x256xf32>,
    %c0_i32_23 = arith.constant 0 : i32
    %30 = arith.cmpi eq, %arg0, %c0_i32_23 : i32
    %31 = arith.extui %30 : i1 to i32
    %c0_i32_24 = arith.constant 0 : i32
    %32 = arith.cmpi ne, %31, %c0_i32_24 : i32
    scf.if %32 {
      %c0_25 = arith.constant 0 : index
      %c0_26 = arith.constant 0 : index
      %33 = vector.load %arg11[%c0_25, %c0_26] : memref<1x256xf32, #tpu.memory_space<vmem>>, vector<1x256xf32>
      %cst_27 = arith.constant 1.250000e-01 : f32
      %34 = vector.broadcast %cst_27 : f32 to vector<1x256xf32>
      %35 = arith.mulf %33, %34 : vector<1x256xf32>
      %c0_28 = arith.constant 0 : index
      %c0_29 = arith.constant 0 : index
      %36 = vector.load %arg12[%c0_28, %c0_29] : memref<1x256xf32, #tpu.memory_space<vmem>>, vector<1x256xf32>
      %cst_30 = arith.constant 1.250000e-01 : f32
      %37 = vector.broadcast %cst_30 : f32 to vector<1x256xf32>
      %38 = arith.mulf %36, %37 : vector<1x256xf32>
      %39 = arith.mulf %35, %35 : vector<1x256xf32>
      %40 = arith.subf %38, %39 : vector<1x256xf32>
      %cst_31 = arith.constant 0.000000e+00 : f32
      %41 = vector.broadcast %cst_31 : f32 to vector<1x256xf32>
      %42 = arith.maximumf %40, %41 : vector<1x256xf32>
      %c0_32 = arith.constant 0 : index
      %c0_33 = arith.constant 0 : index
      %43 = vector.load %arg6[%c0_32, %c0_33] : memref<1x256xf32, #tpu.memory_space<vmem>>, vector<1x256xf32>
      %cst_34 = arith.constant 9.99999974E-6 : f32
      %44 = vector.broadcast %cst_34 : f32 to vector<1x256xf32>
      %45 = arith.addf %42, %44 : vector<1x256xf32>
      %46 = math.rsqrt %45 : vector<1x256xf32>
      %47 = arith.mulf %43, %46 : vector<1x256xf32>
      %c0_35 = arith.constant 0 : index
      %c0_36 = arith.constant 0 : index
      %48 = vector.load %arg9[%c0_35, %c0_36] : memref<1x256xf32, #tpu.memory_space<vmem>>, vector<1x256xf32>
      tpu.vector_store %arg9[%c0_35, %c0_36], %47 {strides = array<i32>} : memref<1x256xf32, #tpu.memory_space<vmem>>, vector<1x256xf32>,
      %c0_37 = arith.constant 0 : index
      %c0_38 = arith.constant 0 : index
      %49 = vector.load %arg7[%c0_37, %c0_38] : memref<1x256xf32, #tpu.memory_space<vmem>>, vector<1x256xf32>
      %50 = arith.mulf %35, %47 : vector<1x256xf32>
      %51 = arith.subf %49, %50 : vector<1x256xf32>
      %c0_39 = arith.constant 0 : index
      %c0_40 = arith.constant 0 : index
      %52 = vector.load %arg10[%c0_39, %c0_40] : memref<1x256xf32, #tpu.memory_space<vmem>>, vector<1x256xf32>
      tpu.vector_store %arg10[%c0_39, %c0_40], %51 {strides = array<i32>} : memref<1x256xf32, #tpu.memory_space<vmem>>, vector<1x256xf32>,
    } else {
    }
    return
  }
  func.func @transform_0(%arg0: i32) -> (i32, i32) {
    %c0_i32 = arith.constant 0 : i32
    %c0_i32_0 = arith.constant 0 : i32
    return %arg0, %c0_i32 : i32, i32
  }
  func.func @transform_1(%arg0: i32) -> (i32, i32) {
    %c0_i32 = arith.constant 0 : i32
    %c0_i32_0 = arith.constant 0 : i32
    %c0_i32_1 = arith.constant 0 : i32
    return %c0_i32, %c0_i32_0 : i32, i32
  }
  func.func @transform_2(%arg0: i32) -> (i32, i32) {
    %c0_i32 = arith.constant 0 : i32
    %c0_i32_0 = arith.constant 0 : i32
    %c0_i32_1 = arith.constant 0 : i32
    return %c0_i32, %c0_i32_0 : i32, i32
  }
  func.func @transform_3(%arg0: i32) -> (i32, i32) {
    %c0_i32 = arith.constant 0 : i32
    %c0_i32_0 = arith.constant 0 : i32
    %c0_i32_1 = arith.constant 0 : i32
    return %c0_i32, %c0_i32_0 : i32, i32
  }
  func.func @transform_4(%arg0: i32) -> (i32, i32) {
    %c0_i32 = arith.constant 0 : i32
    %c0_i32_0 = arith.constant 0 : i32
    %c0_i32_1 = arith.constant 0 : i32
    return %c0_i32, %c0_i32_0 : i32, i32
  }
  func.func @transform_5(%arg0: i32) -> (i32, i32) {
    %c0_i32 = arith.constant 0 : i32
    %c0_i32_0 = arith.constant 0 : i32
    %c0_i32_1 = arith.constant 0 : i32
    return %c0_i32, %c0_i32_0 : i32, i32
  }
  func.func @transform_6(%arg0: i32) -> (i32, i32) {
    %c0_i32 = arith.constant 0 : i32
    %c0_i32_0 = arith.constant 0 : i32
    %c0_i32_1 = arith.constant 0 : i32
    return %c0_i32, %c0_i32_0 : i32, i32
  }
  func.func @transform_7(%arg0: i32) -> (i32, i32) {
    %c0_i32 = arith.constant 0 : i32
    %c0_i32_0 = arith.constant 0 : i32
    return %arg0, %c0_i32 : i32, i32
  }
  func.func @transform_8(%arg0: i32) -> (i32, i32) {
    %c0_i32 = arith.constant 0 : i32
    %c0_i32_0 = arith.constant 0 : i32
    %c0_i32_1 = arith.constant 0 : i32
    return %c0_i32, %c0_i32_0 : i32, i32
  }
  func.func @transform_9(%arg0: i32) -> (i32, i32) {
    %c0_i32 = arith.constant 0 : i32
    %c0_i32_0 = arith.constant 0 : i32
    %c0_i32_1 = arith.constant 0 : i32
    return %c0_i32, %c0_i32_0 : i32, i32
  }
}

</mosaic_0001>

<bundles_post_ra>
// kernel: lotto_forward.5
= control target key start
LH: loop header
LB: loop body
LE: loop exit
PB: predicated region body
PF: predicated region fallthrough
CT: control target
= control target key end

     0   :  { %v26_v5 = vlaneseq  ;;  %s439_s0 = inlined_call_operand.vmem [shape: f32[8,256], index: 0, kind: input, shape index: {}]   ;;  %s440_s1 = inlined_call_operand.vmem [shape: f32[1,256], index: 1, kind: input, shape index: {}]   ;;  %s441_s2 = inlined_call_operand.vmem [shape: f32[1,256], index: 2, kind: input, shape index: {}]   ;;  %s442_s3 = inlined_call_operand.vmem [shape: bf16[256,128], index: 3, kind: input, shape index: {}]   ;;  %s443_s4 = inlined_call_operand.vmem [shape: f32[1,128], index: 4, kind: input, shape index: {}]   ;;  %s444_s5 = inlined_call_operand.hbm [shape: f32[8,128], index: 5, kind: output, shape index: {}]  }
   0x1   :  { %v289_v0 = vld [vmem:[%s442_s3 + $0x40] sm:$0xff]   ;;  %v291_v2 = vld [vmem:[%s442_s3 + $0x48] sm:$0xff]   ;;  %v293_v4 = vld [vmem:[%s442_s3 + $0x50] sm:$0xff]  }
   0x2   :  { %v290_v1 = vld [vmem:[%s442_s3] sm:$0xff]   ;;  %266 = vmatprep.subr.bf16.mxu0 %v289_v0  ;;  %v292_v3 = vld [vmem:[%s442_s3 + $0x8] sm:$0xff]   ;;  %v294_v6 = vld [vmem:[%s442_s3 + $0x10] sm:$0xff]   ;;  %v27_v8 = vshrl.u32 %v26_v5, 7 }
   0x3   :  { %267 = vmatpush3.bf16.msra.mxu0 %v290_v1  ;;  %v295_v7 = vld [vmem:[%s442_s3 + $0x58] sm:$0xff]   ;;  %v297_v10 = vld [vmem:[%s442_s3 + $0x60] sm:$0xff]   ;;  %v299_v14 = vld [vmem:[%s442_s3 + $0x68] sm:$0xff]  }
   0x4   :  { %268 = vmatprep.subr.bf16.mxu0 %v291_v2  ;;  %v296_v9 = vld [vmem:[%s442_s3 + $0x18] sm:$0xff]   ;;  %v32_v11 = vsub.s32 1, %v27_v8  ;;  %v298_v12 = vld [vmem:[%s442_s3 + $0x20] sm:$0xff]   ;;  %v28_v13 = vsub.s32 0, %v27_v8  ;;  %v23_v15 = vld [vmem:[%s439_s0 + $0x8] sm:$0xff] }
   0x5   :  { %v24_v16 = vld [vmem:[%s440_s1] sm:$0x3] }
   0x6   :  { %v38_v17 = vld [vmem:[%s441_s2] sm:$0x3]  ;;  %v33_v18 = vrot.slane %v24_v16, %v32_v11 }
   0x7   :  { %269 = vmatpush3.bf16.msra.mxu0 %v292_v3  ;;  %v47_v19 = vrot.slane %v38_v17, %v32_v11 }
   0x8   :  { %270 = vmatprep.subr.bf16.mxu0 %v293_v4 }
   0xb   :  { %271 = vmatpush3.bf16.msra.mxu0 %v294_v6 }
   0xc   :  { %272 = vmatprep.subr.bf16.mxu0 %v295_v7 }
   0xf   :  { %273 = vmatpush3.bf16.msra.mxu0 %v296_v9 }
  0x10   :  { %274 = vmatprep.subr.bf16.mxu0 %v297_v10 }
  0x11   :  { %10 = vsyncpa [#allocation3], 0  ;;  %v29_v20 = vrot.slane %v24_v16, %v28_v13  ;;  %v300_v21 = vld [vmem:[%s442_s3 + $0x28] sm:$0xff]   ;;  %v37_v22 = vmul.f32 %v33_v18, %v23_v15  ;;  %v22_v23 = vld [vmem:[%s439_s0] sm:$0xff]  ;;  %v43_v26 = vrot.slane %v38_v17, %v28_v13 }
  0x12   :  { %v301_v24 = vld [vmem:[%s442_s3 + $0x70] sm:$0xff]   ;;  %v303_v30 = vld [vmem:[%s442_s3 + $0x78] sm:$0xff]   ;;  %v249_v35 = vld [vmem:[%s443_s4] ss:$0 sm:$0xff] }
  0x13   :  { %275 = vmatpush3.bf16.msra.mxu0 %v298_v12  ;;  %v51_v25 = vadd.f32 %v47_v19, %v37_v22  ;;  %v36_v27 = vmul.f32 %v29_v20, %v22_v23  ;;  %v302_v28 = vld [vmem:[%s442_s3 + $0x30] sm:$0xff]   ;;  %v304_v32 = vld [vmem:[%s442_s3 + $0x38] sm:$0xff]   ;;  %s333_s3 = smov [#allocation2]  }
  0x14   :  { %276 = vmatprep.subr.bf16.mxu0 %v299_v14  ;;  %s241_s7 = sshll.u32 %s333_s3, 4  ;;  %s242_s7 = int_to_ptr.vmem [resolvable:$true] %s241_s7 }
  0x15   :  { %v53_v29 = vpack.c.bf16 %v51_v25, %v51_v25  ;;  %v50_v31 = vadd.f32 %v43_v26, %v36_v27  ;;  %s309_s8 = scalar_lea.vmem %s242_s7, 128  ;;  %p314_p1 = scmp.lt.s32.totalorder %s242_s7, %s242_s7 }
  0x16   :  { %p310_p0 = scmp.ne.s32.totalorder %s242_s7, %s309_s8  ;;  %p315_p2 = scmp.lt.s32.totalorder %s309_s8, %s309_s8 }
  0x17   :  { %277 = vmatpush3.bf16.msra.mxu0 %v300_v21  ;;  %221 = vmatprep.mubr.bf16.mxu0 %v53_v29  ;;  %v52_v33 = vpack.c.bf16 %v50_v31, %v50_v31 }
  0x18   :  { %278 = vmatprep.subr.bf16.mxu0 %v301_v24  ;;  %p316_p3 = por %p315_p2, %p314_p1 }
  0x1a   :  { %p317_p4 = pnand %p316_p3, %p310_p0 }
  0x1b   :  { %279 = vmatpush3.bf16.msra.mxu0 %v302_v28 }
  0x1c   :  { %280 = vmatprep.subr.bf16.mxu0 %v303_v30 }
  0x1f   :  { %281 = vmatpush3.bf16.msra.mxu0 %v304_v32 }
  0x22   :  { %222 = vmatmul.mubr.bf16.vlgmr.msra.gmra.mrb[0].mxu0 %v52_v33 }
  0xf5   :  { %v282_v34 = vpop.f32.mrb[0].mxu0 }
  0xf6   :  { %v283_v36 = vpop.f32.mrb[1].mxu0 }
  0xf7   :  { %v284_v37 = vadd.f32 %v283_v36, %v282_v34  ;;  %v285_v38 = vpop.f32.mrb[2].mxu0 }
  0xf8   :  { %v286_v39 = vpop.f32.mrb[3].mxu0 }
  0xf9   :  { %v224_v40 = vadd.f32 %v284_v37, %v249_v35 }
  0xfb   :  { %v229_v41 = vsub.f32 0.0, %v224_v40 }
  0xfd   :  { %v230_v42 = vmul.f32 1.442695, %v229_v41 }
  0xff   :  { %305 = vpow2.f32 %v230_v42 }
 0x109   :  { %v306_v43 = vpop.eup %305 }
 0x10a   :  { %v232_v44 = vadd.f32 1.0, %v306_v43 }
 0x10c   :  { %307 = vrcp.f32 %v232_v44 }
 0x116   :  { %v308_v45 = vpop.eup %307 }
 0x117   :  { %234 = vst [vmem:[#allocation2] sm:$0xff] %v308_v45 }
 0x118   :  { %320 = shalt.err (!%p317_p4)
}
 0x119   :  { %s321_s10 = scalar_lea.hbm %s444_s5, 128 }
 0x11a   :  { %p322_p5 = scmp.ne.s32.totalorder %s444_s5, %s321_s10  ;;  %p325_p6 = scmp.lt.u32.totalorder %s321_s10, %s444_s5 }
 0x11c   :  { %p327_p7 = pnand %p325_p6, %p322_p5 }
 0x11e   :  { %330 = shalt.err (!%p327_p7)
}
 0x11f   :  { %244 = dma.vmem_to_hbm [thread:$0]  %s242_s7, 128, %s444_s5, [#allocation3]  }
 0x120   :  { %331 = dma.done.wait [#allocation3], 128  }
 0x121   :  { %332 = vsyncadd [#allocation3], 4294967168 }
 0x122   :  { %248 = vsyncpa [#allocation3], 1 }

// kernel: lotto_forward.3
= control target key start
LH: loop header
LB: loop body
LE: loop exit
PB: predicated region body
PF: predicated region fallthrough
CT: control target
= control target key end

     0   :  { %13 = vsyncpa [#allocation5], 0  ;;  %s901_s0 = inlined_call_operand.hbm [shape: f32[8,16], index: 0, kind: input, shape index: {}]   ;;  %s902_s1 = inlined_call_operand.hbm [shape: bf16[16,1024], index: 1, kind: input, shape index: {}]   ;;  %s903_s2 = inlined_call_operand.hbm [shape: f32[1,1024], index: 2, kind: input, shape index: {}]   ;;  %s904_s3 = inlined_call_operand.vmem [shape: f32[1,1024], index: 3, kind: input, shape index: {}]   ;;  %s905_s4 = inlined_call_operand.hbm [shape: f32[1,1024], index: 4, kind: input, shape index: {}]   ;;  %s906_s5 = inlined_call_operand.vmem [shape: f32[8,1024], index: 5, kind: output, shape index: {0}]   ;;  %s907_s6 = inlined_call_operand.vmem [shape: f32[1,1024], index: 6, kind: output, shape index: {1}]   ;;  %s908_s7 = inlined_call_operand.vmem [shape: f32[1,1024], index: 7, kind: output, shape index: {2}]  }
   0x1   :  { %14 = vsyncpa [#allocation7], 0 }
   0x2   :  { %15 = vsyncpa [#allocation10], 0  ;;  %s731_s24 = smov [#allocation6]   ;;  %s637_s28 = scalar_lea.hbm %s902_s1, 1024 }
   0x3   :  { %s31_s25 = sshll.u32 %s731_s24, 4  ;;  %p638_p0 = scmp.ne.s32.totalorder %s902_s1, %s637_s28  ;;  %s32_s25 = int_to_ptr.vmem [resolvable:$true] %s31_s25 }
   0x4   :  { %p641_p1 = scmp.lt.u32.totalorder %s637_s28, %s902_s1 }
   0x6   :  { %p643_p2 = pnand %p641_p1, %p638_p0 }
   0x8   :  { %646 = shalt.err (!%p643_p2)
}
   0x9   :  { %s647_s10 = scalar_lea.vmem %s32_s25, 1024  ;;  %p652_p4 = scmp.lt.s32.totalorder %s32_s25, %s32_s25 }
   0xa   :  { %p648_p3 = scmp.ne.s32.totalorder %s32_s25, %s647_s10  ;;  %p653_p5 = scmp.lt.s32.totalorder %s647_s10, %s647_s10 }
   0xc   :  { %p654_p6 = por %p653_p5, %p652_p4 }
   0xe   :  { %p655_p7 = pnand %p654_p6, %p648_p3 }
  0x10   :  { %658 = shalt.err (!%p655_p7)
}
  0x11   :  { %s732_s11 = smov 512   ;;  %s733_s12 = smov 32  }
  0x12   :  { %37 = dma.hbm_to_vmem [thread:$0]  %s902_s1, 1024, %s32_s25, [#allocation7], %s732_s11, %s732_s11, %s733_s12  }
  0x13   :  { %s734_s15 = smov [#allocation4]   ;;  %s735_s17 = smov [#allocation8]  }
  0x14   :  { %s22_s16 = sshll.u32 %s734_s15, 4  ;;  %s44_s18 = sshll.u32 %s735_s17, 4  ;;  %s23_s16 = int_to_ptr.vmem [resolvable:$true] %s22_s16  ;;  %s45_s18 = int_to_ptr.vmem [resolvable:$true] %s44_s18 }
  0x15   :  { %s659_s21 = scalar_lea.hbm %s901_s0, 128 }
  0x16   :  { %p660_p8 = scmp.ne.s32.totalorder %s901_s0, %s659_s21  ;;  %p663_p9 = scmp.lt.u32.totalorder %s659_s21, %s901_s0 }
  0x18   :  { %p665_p10 = pnand %p663_p9, %p660_p8 }
  0x1a   :  { %668 = shalt.err (!%p665_p10)
}
  0x1b   :  { %s669_s1 = scalar_lea.vmem %s23_s16, 128  ;;  %p674_p12 = scmp.lt.s32.totalorder %s23_s16, %s23_s16 }
  0x1c   :  { %p670_p11 = scmp.ne.s32.totalorder %s23_s16, %s669_s1  ;;  %p675_p13 = scmp.lt.s32.totalorder %s669_s1, %s669_s1 }
  0x1e   :  { %p676_p0 = por %p675_p13, %p674_p12 }
  0x20   :  { %p677_p1 = pnand %p676_p0, %p670_p11 }
  0x22   :  { %680 = shalt.err (!%p677_p1)
}
  0x23   :  { %25 = dma.hbm_to_vmem [thread:$0]  %s901_s0, 128, %s23_s16, [#allocation5]  }
  0x24   :  { %s681_s30 = scalar_lea.hbm %s903_s2, 128 }
  0x25   :  { %p682_p2 = scmp.ne.s32.totalorder %s903_s2, %s681_s30  ;;  %p685_p3 = scmp.lt.u32.totalorder %s681_s30, %s903_s2 }
  0x27   :  { %p687_p4 = pnand %p685_p3, %p682_p2 }
  0x29   :  { %690 = shalt.err (!%p687_p4)
}
  0x2a   :  { %s691_s12 = scalar_lea.vmem %s45_s18, 128  ;;  %p696_p6 = scmp.lt.s32.totalorder %s45_s18, %s45_s18 }
  0x2b   :  { %p692_p5 = scmp.ne.s32.totalorder %s45_s18, %s691_s12  ;;  %p697_p7 = scmp.lt.s32.totalorder %s691_s12, %s691_s12 }
  0x2d   :  { %p698_p8 = por %p697_p7, %p696_p6 }
  0x2f   :  { %p699_p9 = pnand %p698_p8, %p692_p5 }
  0x31   :  { %702 = shalt.err (!%p699_p9)
}
  0x32   :  { %47 = dma.hbm_to_vmem [thread:$0]  %s903_s2, 128, %s45_s18, [#allocation7]  }
  0x33   :  { %s736_s14 = smov [#allocation9]   ;;  %s703_s19 = scalar_lea.hbm %s905_s4, 128 }
  0x34   :  { %s56_s15 = sshll.u32 %s736_s14, 4  ;;  %p704_p10 = scmp.ne.s32.totalorder %s905_s4, %s703_s19  ;;  %s57_s15 = int_to_ptr.vmem [resolvable:$true] %s56_s15 }
  0x35   :  { %p707_p11 = scmp.lt.u32.totalorder %s703_s19, %s905_s4 }
  0x37   :  { %p709_p12 = pnand %p707_p11, %p704_p10 }
  0x39   :  { %712 = shalt.err (!%p709_p12)
}
  0x3a   :  { %s713_s24 = scalar_lea.vmem %s57_s15, 128  ;;  %p718_p0 = scmp.lt.s32.totalorder %s57_s15, %s57_s15 }
  0x3b   :  { %p714_p13 = scmp.ne.s32.totalorder %s57_s15, %s713_s24  ;;  %p719_p1 = scmp.lt.s32.totalorder %s713_s24, %s713_s24 }
  0x3d   :  { %p720_p2 = por %p719_p1, %p718_p0 }
  0x3f   :  { %p721_p3 = pnand %p720_p2, %p714_p13 }
  0x41   :  { %724 = shalt.err (!%p721_p3)
}
  0x42   :  { %59 = dma.hbm_to_vmem [thread:$0]  %s905_s4, 128, %s57_s15, [#allocation10]  }
  0x43   :  { %725 = dma.done.wait [#allocation5], 128  }
  0x44   :  { %726 = vsyncadd [#allocation5], 4294967168 }
  0x45   :  { %727 = dma.done.wait [#allocation7], 1152  }
  0x46   :  { %728 = vsyncadd [#allocation7], 4294966144 }
  0x47   :  { %729 = dma.done.wait [#allocation10], 128  }
  0x48   :  { %730 = vsyncadd [#allocation10], 4294967168  ;;  %v737_v0 = vmov 0   ;;  %v75_v1 = vld [vmem:[#allocation6] sm:$0xff]  ;;  %v76_v3 = vld [vmem:[#allocation6 + $0x8] sm:$0xff]  ;;  %vm165_vm0 = vcmask 130048   ;;  %v85_v19 = vlaneseq }
  0x49   :  { %201 = vmatprep.mubr.bf16.mxu0 %v737_v0  ;;  %242 = vmatprep.mubr.bf16.mxu1 %v737_v0  ;;  %v79_v2 = vld [vmem:[#allocation6 + $0x20] sm:$0xff]  ;;  %v80_v5 = vld [vmem:[#allocation6 + $0x28] sm:$0xff]  ;;  %v73_v7 = vld [vmem:[#allocation4] sm:$0xff]  ;;  %v738_v27 = vmov 1966171168  }
  0x4a   :  { %v616_v4 = vcombine.high %v75_v1, %v79_v2  ;;  %v615_v6 = vcombine.low %v75_v1, %v79_v2  ;;  %v77_v8 = vld [vmem:[#allocation6 + $0x10] sm:$0xff]  ;;  %v618_v9 = vcombine.high %v76_v3, %v80_v5  ;;  %v617_v10 = vcombine.low %v76_v3, %v80_v5  ;;  %v78_v12 = vld [vmem:[#allocation6 + $0x18] sm:$0xff]  ;;  %v83_v22 = vld [vmem:[#allocation8] sm:$0xff] }
  0x4b   :  { %v81_v11 = vld [vmem:[#allocation6 + $0x30] sm:$0xff]  ;;  %v82_v13 = vld [vmem:[#allocation6 + $0x38] sm:$0xff]  ;;  %v74_v14 = vpack.c.bf16 %v73_v7, %v73_v7  ;;  %v86_v20 = vshrl.u32 %v85_v19, 7  ;;  %v417_v28 = vunpack.c.l.s4 %v738_v27 }
  0x4c   :  { %169 = vmatprep.subr.bf16.mxu0 %v616_v4  ;;  %v620_v15 = vcombine.high %v77_v8, %v81_v11  ;;  %v622_v16 = vcombine.high %v78_v12, %v82_v13  ;;  %210 = vmatprep.subr.bf16.mxu1 %v618_v9  ;;  %v619_v17 = vcombine.low %v77_v8, %v81_v11 }
  0x4d   :  { %170 = vmatpush1.bf16.msra.mxu0 %v615_v6  ;;  %211 = vmatpush1.bf16.msra.mxu1 %v617_v10  ;;  %v621_v18 = vcombine.low %v78_v12, %v82_v13  ;;  %v87_v21 = vsub.s32 0, %v86_v20  ;;  %v95_v23 = vsub.s32 2, %v86_v20  ;;  %v91_v24 = vsub.s32 1, %v86_v20 }
  0x4e   :  { %251 = vmatprep.subr.bf16.mxu0 %v620_v15  ;;  %292 = vmatprep.subr.bf16.mxu1 %v622_v16  ;;  %v99_v25 = vsub.s32 3, %v86_v20  ;;  %v103_v32 = vsub.s32 4, %v86_v20  ;;  %v111_v33 = vsub.s32 6, %v86_v20  ;;  %v107_v35 = vsub.s32 5, %v86_v20 }
  0x4f   :  { %v88_v26 = vrot.slane %v83_v22, %v87_v21  ;;  %v96_v29 = vrot.slane %v83_v22, %v95_v23  ;;  %v92_v30 = vrot.slane %v83_v22, %v91_v24  ;;  %v115_v36 = vsub.s32 7, %v86_v20 }
  0x50   :  { %623 = vmatmul.mubr.msk.bf16.vlgmr.msra.gmra.mrb[0].mxu0 %vm165_vm0, %v74_v14  ;;  %624 = vmatmul.mubr.msk.bf16.vlgmr.msra.gmra.mrb[0].mxu1 %vm165_vm0, %v74_v14  ;;  %v100_v31 = vrot.slane %v83_v22, %v99_v25  ;;  %v418_v38 = vunpack.c.0.s8 %v417_v28  ;;  %v827_v49 = vrot.slane %v83_v22, %v103_v32  ;;  %v829_v50 = vrot.slane %v83_v22, %v111_v33 }
  0x51   :  { %252 = vmatpush1.bf16.msra.mxu0 %v619_v17  ;;  %293 = vmatpush1.bf16.msra.mxu1 %v621_v18  ;;  %v831_v54 = vrot.slane %v83_v22, %v107_v35  ;;  %v833_v55 = vrot.slane %v83_v22, %v115_v36 }
  0x52   :  { %283 = vmatprep.mubr.bf16.mxu0 %v737_v0  ;;  %324 = vmatprep.mubr.bf16.mxu1 %v737_v0  ;;  %v838_v57 = vsub.s32 %v418_v38, %v86_v20 }
  0x58   :  { %625 = vmatmul.mubr.msk.bf16.vlgmr.msra.gmra.mrb[4].mxu0 %vm165_vm0, %v74_v14  ;;  %626 = vmatmul.mubr.msk.bf16.vlgmr.msra.gmra.mrb[4].mxu1 %vm165_vm0, %v74_v14 }
 0x123   :  { %v203_v34 = vpop.f32.mrb[0].mxu0  ;;  %v244_v39 = vpop.f32.mrb[0].mxu1 }
 0x124   :  { %v204_v37 = vadd.f32 %v203_v34, %v88_v26  ;;  %v205_v40 = vpop.f32.mrb[1].mxu0  ;;  %v245_v41 = vadd.f32 %v244_v39, %v96_v29  ;;  %v246_v43 = vpop.f32.mrb[1].mxu1 }
 0x125   :  { %v206_v42 = vadd.f32 %v205_v40, %v92_v30  ;;  %v207_v44 = vpop.f32.mrb[2].mxu0  ;;  %v247_v46 = vadd.f32 %v246_v43, %v100_v31  ;;  %v248_v47 = vpop.f32.mrb[2].mxu1 }
 0x126   :  { %v333_v45 = vmax.f32 %v204_v37, 0.0  ;;  %v208_v48 = vpop.f32.mrb[3].mxu0  ;;  %v335_v51 = vmax.f32 %v245_v41, 0.0  ;;  %v249_v53 = vpop.f32.mrb[3].mxu1 }
 0x127   :  { %v334_v52 = vmax.f32 %v206_v42, 0.0  ;;  %v336_v59 = vmax.f32 %v247_v46, 0.0 }
 0x128   :  { %347 = vst [vmem:[%s906_s5] sm:$0xff] %v333_v45  ;;  %v356_v56 = vrot.slane %v333_v45, 4  ;;  %v465_v58 = vmul.f32 %v333_v45, %v333_v45  ;;  %349 = vst [vmem:[%s906_s5 + $0x10] sm:$0xff] %v335_v51  ;;  %v368_v60 = vrot.slane %v335_v51, 4  ;;  %v467_v61 = vmul.f32 %v335_v51, %v335_v51 }
 0x129   :  { %348 = vst [vmem:[%s906_s5 + $0x8] sm:$0xff] %v334_v52  ;;  %v362_v62 = vrot.slane %v334_v52, 4  ;;  %v466_v63 = vmul.f32 %v334_v52, %v334_v52  ;;  %350 = vst [vmem:[%s906_s5 + $0x18] sm:$0xff] %v336_v59  ;;  %v374_v2 = vrot.slane %v336_v59, 4  ;;  %v468_v3 = vmul.f32 %v336_v59, %v336_v59 }
 0x12a   :  { %v357_v0 = vadd.f32 %v356_v56, %v333_v45  ;;  %v473_v1 = vrot.slane %v465_v58, 4  ;;  %v369_v4 = vadd.f32 %v368_v60, %v335_v51  ;;  %v485_v5 = vrot.slane %v467_v61, 4 }
 0x12b   :  { %v363_v6 = vadd.f32 %v362_v62, %v334_v52  ;;  %v479_v7 = vrot.slane %v466_v63, 4  ;;  %v285_v8 = vpop.f32.mrb[4].mxu0  ;;  %v375_v11 = vadd.f32 %v374_v2, %v336_v59  ;;  %v491_v12 = vrot.slane %v468_v3, 4  ;;  %v326_v13 = vpop.f32.mrb[4].mxu1 }
 0x12c   :  { %v358_v9 = vrot.slane %v357_v0, 2  ;;  %v474_v10 = vadd.f32 %v473_v1, %v465_v58  ;;  %v287_v14 = vpop.f32.mrb[5].mxu0  ;;  %v370_v15 = vrot.slane %v369_v4, 2  ;;  %v486_v16 = vadd.f32 %v485_v5, %v467_v61  ;;  %v328_v19 = vpop.f32.mrb[5].mxu1 }
 0x12d   :  { %v364_v17 = vrot.slane %v363_v6, 2  ;;  %v480_v18 = vadd.f32 %v479_v7, %v466_v63  ;;  %v289_v20 = vpop.f32.mrb[6].mxu0  ;;  %v376_v23 = vrot.slane %v375_v11, 2  ;;  %v492_v24 = vadd.f32 %v491_v12, %v468_v3  ;;  %v330_v25 = vpop.f32.mrb[6].mxu1 }
 0x12e   :  { %v359_v21 = vadd.f32 %v358_v9, %v357_v0  ;;  %v475_v22 = vrot.slane %v474_v10, 2  ;;  %v290_v26 = vpop.f32.mrb[7].mxu0  ;;  %v371_v27 = vadd.f32 %v370_v15, %v369_v4  ;;  %v487_v28 = vrot.slane %v486_v16, 2  ;;  %v331_v31 = vpop.f32.mrb[7].mxu1 }
 0x12f   :  { %v365_v29 = vadd.f32 %v364_v17, %v363_v6  ;;  %v481_v30 = vrot.slane %v480_v18, 2  ;;  %v377_v34 = vadd.f32 %v376_v23, %v375_v11  ;;  %v493_v35 = vrot.slane %v492_v24, 2 }
 0x130   :  { %v360_v32 = vrot.slane %v359_v21, 1  ;;  %v476_v33 = vadd.f32 %v475_v22, %v474_v10  ;;  %v372_v36 = vrot.slane %v371_v27, 1  ;;  %v488_v37 = vadd.f32 %v487_v28, %v486_v16 }
 0x131   :  { %v366_v38 = vrot.slane %v365_v29, 1  ;;  %v482_v39 = vadd.f32 %v481_v30, %v480_v18  ;;  %v378_v42 = vrot.slane %v377_v34, 1  ;;  %v494_v43 = vadd.f32 %v493_v35, %v492_v24 }
 0x132   :  { %v361_v40 = vadd.f32 %v360_v32, %v359_v21  ;;  %v477_v41 = vrot.slane %v476_v33, 1  ;;  %v373_v44 = vadd.f32 %v372_v36, %v371_v27  ;;  %v489_v45 = vrot.slane %v488_v37, 1 }
 0x133   :  { %v367_v46 = vadd.f32 %v366_v38, %v365_v29  ;;  %v483_v47 = vrot.slane %v482_v39, 1  ;;  %v379_v51 = vadd.f32 %v378_v42, %v377_v34  ;;  %v495_v52 = vrot.slane %v494_v43, 1 }
 0x134   :  { %v478_v48 = vadd.f32 %v477_v41, %v476_v33  ;;  %v286_v53 = vadd.f32 %v285_v8, %v827_v49  ;;  %v490_v56 = vadd.f32 %v489_v45, %v488_v37  ;;  %v327_v60 = vadd.f32 %v326_v13, %v829_v50 }
 0x135   :  { %v412_v58 = vcombine.low %v361_v40, %v367_v46  ;;  %v484_v59 = vadd.f32 %v483_v47, %v482_v39  ;;  %v413_v61 = vcombine.low %v373_v44, %v379_v51  ;;  %v496_v62 = vadd.f32 %v495_v52, %v494_v43 }
 0x136   :  { %v337_v63 = vmax.f32 %v286_v53, 0.0  ;;  %v288_v0 = vadd.f32 %v287_v14, %v831_v54  ;;  %v339_v3 = vmax.f32 %v327_v60, 0.0  ;;  %v329_v4 = vadd.f32 %v328_v19, %v833_v55 }
 0x137   :  { %v853_v1 = vrot.slane %v412_v58, %v838_v57  ;;  %v529_v2 = vcombine.low %v478_v48, %v484_v59  ;;  %v857_v5 = vrot.slane %v413_v61, %v838_v57  ;;  %v530_v49 = vcombine.low %v490_v56, %v496_v62 }
 0x138   :  { %351 = vst [vmem:[%s906_s5 + $0x20] sm:$0xff] %v337_v63  ;;  %v380_v50 = vrot.slane %v337_v63, 4  ;;  %v469_v6 = vmul.f32 %v337_v63, %v337_v63  ;;  %353 = vst [vmem:[%s906_s5 + $0x30] sm:$0xff] %v339_v3  ;;  %v392_v54 = vrot.slane %v339_v3, 4  ;;  %v471_v8 = vmul.f32 %v339_v3, %v339_v3 }
 0x139   :  { %v863_v7 = vrot.slane %v529_v2, %v838_v57  ;;  %v338_v55 = vmax.f32 %v288_v0, 0.0  ;;  %v444_v9 = vcombine.low %v853_v1, %v857_v5  ;;  %v871_v10 = vrot.slane %v530_v49, %v838_v57  ;;  %v591_v1 = vld [vmem:[%s904_s3] sm:$0xff] }
 0x13a   :  { %v381_v11 = vadd.f32 %v380_v50, %v337_v63  ;;  %v497_v12 = vrot.slane %v469_v6, 4  ;;  %v393_v13 = vadd.f32 %v392_v54, %v339_v3  ;;  %v509_v14 = vrot.slane %v471_v8, 4 }
 0x13b   :  { %352 = vst [vmem:[%s906_s5 + $0x28] sm:$0xff] %v338_v55  ;;  %v386_v15 = vrot.slane %v338_v55, 4  ;;  %v470_v16 = vmul.f32 %v338_v55, %v338_v55  ;;  %v561_v17 = vcombine.low %v863_v7, %v871_v10  ;;  %v340_v26 = vmax.f32 %v329_v4, 0.0 }
 0x13c   :  { %v382_v18 = vrot.slane %v381_v11, 2  ;;  %v498_v19 = vadd.f32 %v497_v12, %v469_v6  ;;  %v394_v20 = vrot.slane %v393_v13, 2  ;;  %v510_v21 = vadd.f32 %v509_v14, %v471_v8 }
 0x13d   :  { %v387_v22 = vadd.f32 %v386_v15, %v338_v55  ;;  %v503_v23 = vrot.slane %v470_v16, 4  ;;  %354 = vst [vmem:[%s906_s5 + $0x38] sm:$0xff] %v340_v26  ;;  %v398_v33 = vrot.slane %v340_v26, 4  ;;  %v472_v34 = vmul.f32 %v340_v26, %v340_v26 }
 0x13e   :  { %v383_v24 = vadd.f32 %v382_v18, %v381_v11  ;;  %v499_v25 = vrot.slane %v498_v19, 2  ;;  %v395_v27 = vadd.f32 %v394_v20, %v393_v13  ;;  %v511_v28 = vrot.slane %v510_v21, 2 }
 0x13f   :  { %v388_v29 = vrot.slane %v387_v22, 2  ;;  %v504_v30 = vadd.f32 %v503_v23, %v470_v16  ;;  %v399_v39 = vadd.f32 %v398_v33, %v340_v26  ;;  %v515_v40 = vrot.slane %v472_v34, 4 }
 0x140   :  { %v384_v31 = vrot.slane %v383_v24, 1  ;;  %v500_v32 = vadd.f32 %v499_v25, %v498_v19  ;;  %v512_v38 = vadd.f32 %v511_v28, %v510_v21  ;;  %v396_v44 = vrot.slane %v395_v27, 1 }
 0x141   :  { %v389_v35 = vadd.f32 %v388_v29, %v387_v22  ;;  %v505_v36 = vrot.slane %v504_v30, 2  ;;  %v400_v45 = vrot.slane %v399_v39, 2  ;;  %v516_v46 = vadd.f32 %v515_v40, %v472_v34 }
 0x142   :  { %v501_v37 = vrot.slane %v500_v32, 1  ;;  %v385_v41 = vadd.f32 %v384_v31, %v383_v24  ;;  %v513_v52 = vrot.slane %v512_v38, 1  ;;  %v397_v60 = vadd.f32 %v396_v44, %v395_v27  ;;  %v596_v24 = vld [vmem:[#allocation9] sm:$0xff] }
 0x143   :  { %v390_v42 = vrot.slane %v389_v35, 1  ;;  %v506_v43 = vadd.f32 %v505_v36, %v504_v30  ;;  %v401_v53 = vadd.f32 %v400_v45, %v399_v39  ;;  %v517_v56 = vrot.slane %v516_v46, 2 }
 0x144   :  { %v502_v47 = vadd.f32 %v501_v37, %v500_v32  ;;  %v514_v0 = vadd.f32 %v513_v52, %v512_v38  ;;  %v452_v10 = vrot.slane %v444_v9, %v838_v57  ;;  %v569_v13 = vrot.slane %v561_v17, %v838_v57 }
 0x145   :  { %v391_v48 = vadd.f32 %v390_v42, %v389_v35  ;;  %v507_v51 = vrot.slane %v506_v43, 1  ;;  %v402_v61 = vrot.slane %v401_v53, 1  ;;  %v518_v62 = vadd.f32 %v517_v56, %v516_v46 }
 0x147   :  { %v414_v58 = vcombine.low %v385_v41, %v391_v48  ;;  %v508_v59 = vadd.f32 %v507_v51, %v506_v43  ;;  %v403_v2 = vadd.f32 %v402_v61, %v401_v53  ;;  %v519_v3 = vrot.slane %v518_v62, 1 }
 0x149   :  { %v531_v63 = vcombine.low %v502_v47, %v508_v59  ;;  %v436_v4 = vrot.slane %v414_v58, %v838_v57  ;;  %v415_v49 = vcombine.low %v397_v60, %v403_v2  ;;  %v520_v50 = vadd.f32 %v519_v3, %v518_v62 }
 0x14b   :  { %v553_v6 = vrot.slane %v531_v63, %v838_v57  ;;  %v443_v7 = vrot.slane %v415_v49, %v838_v57  ;;  %v532_v54 = vcombine.low %v514_v0, %v520_v50 }
 0x14d   :  { %v445_v8 = vcombine.low %v436_v4, %v443_v7  ;;  %v560_v55 = vrot.slane %v532_v54, %v838_v57 }
 0x14f   :  { %v459_v11 = vrot.slane %v445_v8, %v838_v57  ;;  %v562_v12 = vcombine.low %v553_v6, %v560_v55 }
 0x151   :  { %v460_v14 = vcombine.low %v452_v10, %v459_v11  ;;  %v576_v15 = vrot.slane %v562_v12, %v838_v57 }
 0x153   :  { %v577_v16 = vcombine.low %v569_v13, %v576_v15  ;;  %v585_v18 = vmul.f32 0.125, %v460_v14 }
 0x155   :  { %v587_v19 = vmul.f32 0.125, %v577_v16  ;;  %v588_v20 = vmul.f32 %v585_v18, %v585_v18 }
 0x157   :  { %v589_v21 = vsub.f32 %v587_v19, %v588_v20 }
 0x159   :  { %v590_v22 = vmax.f32 %v589_v21, 0.0 }
 0x15b   :  { %v592_v23 = vadd.f32 1e-05, %v590_v22 }
 0x15d   :  { %635 = vrsqrt.f32 %v592_v23 }
 0x167   :  { %v636_v5 = vpop.eup %635 }
 0x168   :  { %v594_v9 = vmul.f32 %v636_v5, %v591_v1 }
 0x16a   :  { %595 = vst [vmem:[%s907_s6] sm:$0xff] %v594_v9  ;;  %v597_v57 = vmul.f32 %v594_v9, %v585_v18 }
 0x16c   :  { %v598_v17 = vsub.f32 %v596_v24, %v597_v57 }
 0x16e   :  { %599 = vst [vmem:[%s908_s7] sm:$0xff] %v598_v17 }
 0x16f   :  { %612 = vsyncpa [#allocation5], 1 }
 0x170   :  { %613 = vsyncpa [#allocation7], 1 }
 0x171   :  { %614 = vsyncpa [#allocation10], 1 }

// kernel: lotto_forward.4
= control target key start
LH: loop header
LB: loop body
LE: loop exit
PB: predicated region body
PF: predicated region fallthrough
CT: control target
= control target key end

     0   :  { %15 = vsyncpa [#allocation5], 0  ;;  %s1584_s30 = smov [#allocation4]   ;;  %s1769_s0 = inlined_call_operand.vmem [shape: f32[8,1024], index: 0, kind: input, shape index: {}]   ;;  %s1770_s1 = inlined_call_operand.vmem [shape: f32[1,1024], index: 1, kind: input, shape index: {}]   ;;  %s1771_s2 = inlined_call_operand.vmem [shape: f32[1,1024], index: 2, kind: input, shape index: {}]   ;;  %s1772_s3 = inlined_call_operand.hbm [shape: bf16[1024,256], index: 3, kind: input, shape index: {}]   ;;  %s1773_s4 = inlined_call_operand.vmem [shape: f32[1,256], index: 4, kind: input, shape index: {}]   ;;  %s1774_s5 = inlined_call_operand.vmem [shape: f32[1,256], index: 5, kind: input, shape index: {}]   ;;  %s1775_s6 = inlined_call_operand.vmem [shape: f32[1,256], index: 6, kind: input, shape index: {}]   ;;  %s1776_s7 = inlined_call_operand.vmem [shape: f32[8,256], index: 7, kind: output, shape index: {0}]   ;;  %s1777_s8 = inlined_call_operand.vmem [shape: f32[1,256], index: 8, kind: output, shape index: {1}]   ;;  %s1778_s9 = inlined_call_operand.vmem [shape: f32[1,256], index: 9, kind: output, shape index: {2}]  }
   0x1   :  { %s27_s10 = sshll.u32 %s1584_s30, 4  ;;  %s1560_s13 = scalar_lea.hbm %s1772_s3, 16384  ;;  %s28_s10 = int_to_ptr.vmem [resolvable:$true] %s27_s10 }
   0x2   :  { %p1561_p0 = scmp.ne.s32.totalorder %s1772_s3, %s1560_s13  ;;  %p1564_p1 = scmp.lt.u32.totalorder %s1560_s13, %s1772_s3 }
   0x4   :  { %p1566_p2 = pnand %p1564_p1, %p1561_p0 }
   0x6   :  { %1569 = shalt.err (!%p1566_p2)
}
   0x7   :  { %s1570_s18 = scalar_lea.vmem %s28_s10, 16384  ;;  %p1575_p4 = scmp.lt.s32.totalorder %s28_s10, %s28_s10 }
   0x8   :  { %p1571_p3 = scmp.ne.s32.totalorder %s28_s10, %s1570_s18  ;;  %p1576_p5 = scmp.lt.s32.totalorder %s1570_s18, %s1570_s18 }
   0xa   :  { %p1577_p6 = por %p1576_p5, %p1575_p4 }
   0xc   :  { %p1578_p7 = pnand %p1577_p6, %p1571_p3 }
   0xe   :  { %1581 = shalt.err (!%p1578_p7)
}
   0xf   :  { %s1585_s19 = smov 128   ;;  %s1586_s20 = smov 8  }
  0x10   :  { %33 = dma.hbm_to_vmem [thread:$0]  %s1772_s3, 16384, %s28_s10, [#allocation5], %s1585_s19, %s1585_s19, %s1586_s20  }
  0x11   :  { %1582 = dma.done.wait [#allocation5], 16384  }
  0x12   :  { %1583 = vsyncadd [#allocation5], 4294950912  ;;  %v1366_v0 = vld [vmem:[#allocation4 + $0x4] ss:$8 sps:$4 sm:$0xff]   ;;  %v1370_v2 = vld [vmem:[#allocation4] ss:$8 sps:$4 sm:$0xff]   ;;  %v53_v37 = vlaneseq }
  0x13   :  { %v1368_v1 = vld [vmem:[#allocation4 + $0x204] ss:$8 sps:$4 sm:$0xff]   ;;  %939 = vmatprep.subr.bf16.mxu1 %v1366_v0  ;;  %v1371_v3 = vld [vmem:[#allocation4 + $0x200] ss:$8 sps:$4 sm:$0xff]   ;;  %v1372_v4 = vld [vmem:[#allocation4 + $0x14] ss:$8 sps:$4 sm:$0xff]  }
  0x14   :  { %1021 = vmatprep.subr.bf16.mxu0 %v1368_v1  ;;  %940 = vmatpush1.bf16.msra.mxu1 %v1370_v2  ;;  %v1374_v5 = vld [vmem:[#allocation4 + $0x214] ss:$8 sps:$4 sm:$0xff]   ;;  %v1376_v6 = vld [vmem:[#allocation4 + $0x10] ss:$8 sps:$4 sm:$0xff]   ;;  %v1378_v8 = vld [vmem:[#allocation4 + $0x24] ss:$8 sps:$4 sm:$0xff]  }
  0x15   :  { %1022 = vmatpush1.bf16.msra.mxu0 %v1371_v3  ;;  %941 = vmatprep.subr.bf16.mxu1 %v1372_v4  ;;  %v1377_v7 = vld [vmem:[#allocation4 + $0x210] ss:$8 sps:$4 sm:$0xff]   ;;  %v1380_v9 = vld [vmem:[#allocation4 + $0x224] ss:$8 sps:$4 sm:$0xff]   ;;  %v1382_v10 = vld [vmem:[#allocation4 + $0x20] ss:$8 sps:$4 sm:$0xff]  }
  0x16   :  { %1023 = vmatprep.subr.bf16.mxu0 %v1374_v5  ;;  %v1383_v11 = vld [vmem:[#allocation4 + $0x220] ss:$8 sps:$4 sm:$0xff]   ;;  %v1384_v12 = vld [vmem:[#allocation4 + $0x34] ss:$8 sps:$4 sm:$0xff]   ;;  %v1388_v14 = vld [vmem:[#allocation4 + $0x30] ss:$8 sps:$4 sm:$0xff]  }
  0x17   :  { %v1386_v13 = vld [vmem:[#allocation4 + $0x234] ss:$8 sps:$4 sm:$0xff]   ;;  %v1389_v15 = vld [vmem:[#allocation4 + $0x230] ss:$8 sps:$4 sm:$0xff]   ;;  %v1390_v16 = vld [vmem:[#allocation4 + $0x44] ss:$8 sps:$4 sm:$0xff]  }
  0x18   :  { %942 = vmatpush1.bf16.msra.mxu1 %v1376_v6  ;;  %v1392_v17 = vld [vmem:[#allocation4 + $0x244] ss:$8 sps:$4 sm:$0xff]   ;;  %v1394_v18 = vld [vmem:[#allocation4 + $0x40] ss:$8 sps:$4 sm:$0xff]   ;;  %v1396_v20 = vld [vmem:[#allocation4 + $0x54] ss:$8 sps:$4 sm:$0xff]  }
  0x19   :  { %1024 = vmatpush1.bf16.msra.mxu0 %v1377_v7  ;;  %943 = vmatprep.subr.bf16.mxu1 %v1378_v8  ;;  %v1395_v19 = vld [vmem:[#allocation4 + $0x240] ss:$8 sps:$4 sm:$0xff]   ;;  %v1398_v21 = vld [vmem:[#allocation4 + $0x254] ss:$8 sps:$4 sm:$0xff]   ;;  %v1400_v22 = vld [vmem:[#allocation4 + $0x50] ss:$8 sps:$4 sm:$0xff]  }
  0x1a   :  { %1025 = vmatprep.subr.bf16.mxu0 %v1380_v9  ;;  %v1401_v23 = vld [vmem:[#allocation4 + $0x250] ss:$8 sps:$4 sm:$0xff]   ;;  %v1402_v24 = vld [vmem:[#allocation4 + $0x64] ss:$8 sps:$4 sm:$0xff]   ;;  %v1406_v26 = vld [vmem:[#allocation4 + $0x60] ss:$8 sps:$4 sm:$0xff]  }
  0x1b   :  { %v1404_v25 = vld [vmem:[#allocation4 + $0x264] ss:$8 sps:$4 sm:$0xff]   ;;  %v1407_v27 = vld [vmem:[#allocation4 + $0x260] ss:$8 sps:$4 sm:$0xff]   ;;  %v1408_v28 = vld [vmem:[#allocation4 + $0x74] ss:$8 sps:$4 sm:$0xff]  }
  0x1c   :  { %944 = vmatpush1.bf16.msra.mxu1 %v1382_v10  ;;  %v1410_v29 = vld [vmem:[#allocation4 + $0x274] ss:$8 sps:$4 sm:$0xff]   ;;  %v1412_v30 = vld [vmem:[#allocation4 + $0x70] ss:$8 sps:$4 sm:$0xff]   ;;  %v1414_v32 = vld [vmem:[#allocation4 + $0x84] ss:$8 sps:$4 sm:$0xff]  }
  0x1d   :  { %1026 = vmatpush1.bf16.msra.mxu0 %v1383_v11  ;;  %945 = vmatprep.subr.bf16.mxu1 %v1384_v12  ;;  %v1413_v31 = vld [vmem:[#allocation4 + $0x270] ss:$8 sps:$4 sm:$0xff]   ;;  %v1416_v33 = vld [vmem:[#allocation4 + $0x284] ss:$8 sps:$4 sm:$0xff]   ;;  %v1418_v34 = vld [vmem:[#allocation4 + $0x80] ss:$8 sps:$4 sm:$0xff]  }
  0x1e   :  { %1027 = vmatprep.subr.bf16.mxu0 %v1386_v13  ;;  %v1419_v35 = vld [vmem:[#allocation4 + $0x280] ss:$8 sps:$4 sm:$0xff]   ;;  %v1420_v36 = vld [vmem:[#allocation4 + $0x94] ss:$8 sps:$4 sm:$0xff]   ;;  %v1424_v39 = vld [vmem:[#allocation4 + $0x90] ss:$8 sps:$4 sm:$0xff]  }
  0x1f   :  { %v1422_v38 = vld [vmem:[#allocation4 + $0x294] ss:$8 sps:$4 sm:$0xff]   ;;  %v1425_v40 = vld [vmem:[#allocation4 + $0x290] ss:$8 sps:$4 sm:$0xff]   ;;  %v1426_v41 = vld [vmem:[#allocation4 + $0xa4] ss:$8 sps:$4 sm:$0xff]  }
  0x20   :  { %946 = vmatpush1.bf16.msra.mxu1 %v1388_v14  ;;  %v1652_v42 = vshrl.u32 %v53_v37, 7  ;;  %v1428_v43 = vld [vmem:[#allocation4 + $0x2a4] ss:$8 sps:$4 sm:$0xff]   ;;  %v1430_v44 = vld [vmem:[#allocation4 + $0xa0] ss:$8 sps:$4 sm:$0xff]   ;;  %vm1729_vm0 = vcmp.lt.s32.totalorder %v53_v37, 256 }
  0x21   :  { %1028 = vmatpush1.bf16.msra.mxu0 %v1389_v15  ;;  %947 = vmatprep.subr.bf16.mxu1 %v1390_v16  ;;  %v1431_v45 = vld [vmem:[#allocation4 + $0x2a0] ss:$8 sps:$4 sm:$0xff]   ;;  %v1432_v46 = vld [vmem:[#allocation4 + $0xb4] ss:$8 sps:$4 sm:$0xff]   ;;  %v1436_v50 = vld [vmem:[#allocation4 + $0xb0] ss:$8 sps:$4 sm:$0xff]  }
  0x22   :  { %1029 = vmatprep.subr.bf16.mxu0 %v1392_v17  ;;  %v1655_v47 = vsub.s32 1, %v1652_v42  ;;  %v75_v48 = vsub.s32 5, %v1652_v42  ;;  %v1434_v49 = vld [vmem:[#allocation4 + $0x2b4] ss:$8 sps:$4 sm:$0xff]   ;;  %v1437_v51 = vld [vmem:[#allocation4 + $0x2b0] ss:$8 sps:$4 sm:$0xff]  }
  0x23   :  { %v44_v52 = vld [vmem:[%s1769_s0 + $0x8] sm:$0xff]  ;;  %v1664_v53 = vld [vmem:[%s1770_s1] sm:$0xff]  ;;  %v1681_v0 = vsub.s32 0, %v1652_v42  ;;  %v71_v1 = vsub.s32 4, %v1652_v42  ;;  %v1448_v8 = vld [vmem:[#allocation4 + $0xd0] ss:$8 sps:$4 sm:$0xff]  }
  0x24   :  { %948 = vmatpush1.bf16.msra.mxu1 %v1394_v18  ;;  %v1669_v54 = vld [vmem:[%s1771_s2] sm:$0xff]  ;;  %v1438_v55 = vld [vmem:[#allocation4 + $0xc4] ss:$8 sps:$4 sm:$0xff]   ;;  %v60_v57 = vrot.slane %v1664_v53, %v1655_v47  ;;  %v76_v59 = vrot.slane %v1664_v53, %v75_v48  ;;  %v1449_v11 = vld [vmem:[#allocation4 + $0x2d0] ss:$8 sps:$4 sm:$0xff]  }
  0x25   :  { %1030 = vmatpush1.bf16.msra.mxu0 %v1395_v19  ;;  %949 = vmatprep.subr.bf16.mxu1 %v1396_v20  ;;  %v1440_v56 = vld [vmem:[#allocation4 + $0x2c4] ss:$8 sps:$4 sm:$0xff]   ;;  %v110_v58 = vrot.slane %v1669_v54, %v1655_v47  ;;  %v126_v61 = vrot.slane %v1669_v54, %v75_v48  ;;  %v1442_v2 = vld [vmem:[#allocation4 + $0xc0] ss:$8 sps:$4 sm:$0xff]   ;;  %v1444_v6 = vld [vmem:[#allocation4 + $0xd4] ss:$8 sps:$4 sm:$0xff]   ;;  %v56_v12 = vrot.slane %v1664_v53, %v1681_v0 }
  0x26   :  { %1031 = vmatprep.subr.bf16.mxu0 %v1398_v21  ;;  %v48_v60 = vld [vmem:[%s1769_s0 + $0x28] sm:$0xff]  ;;  %v94_v62 = vmul.f32 %v60_v57, %v44_v52  ;;  %v1446_v7 = vld [vmem:[#allocation4 + $0x2d4] ss:$8 sps:$4 sm:$0xff]   ;;  %v72_v13 = vrot.slane %v1664_v53, %v71_v1  ;;  %v106_v19 = vrot.slane %v1669_v54, %v1681_v0  ;;  %v122_v21 = vrot.slane %v1669_v54, %v71_v1  ;;  %v1495_v1 = vld [vmem:[#allocation4 + $0x350] ss:$8 sps:$4 sm:$0xff]  }
  0x27   :  { %v98_v63 = vmul.f32 %v76_v59, %v48_v60  ;;  %v1443_v3 = vld [vmem:[#allocation4 + $0x2c0] ss:$8 sps:$4 sm:$0xff]   ;;  %v1450_v16 = vld [vmem:[#allocation4 + $0xe4] ss:$8 sps:$4 sm:$0xff]   ;;  %v1485_v48 = vld [vmem:[#allocation4 + $0x334] ss:$8 sps:$4 sm:$0xff]  }
  0x28   :  { %950 = vmatpush1.bf16.msra.mxu1 %v1400_v22  ;;  %v144_v4 = vadd.f32 %v110_v58, %v94_v62  ;;  %v43_v14 = vld [vmem:[%s1769_s0] sm:$0xff]  ;;  %v1452_v17 = vld [vmem:[#allocation4 + $0x2e4] ss:$8 sps:$4 sm:$0xff]   ;;  %v63_v59 = vsub.s32 2, %v1652_v42  ;;  %v79_v62 = vsub.s32 6, %v1652_v42 }
  0x29   :  { %1032 = vmatpush1.bf16.msra.mxu0 %v1401_v23  ;;  %951 = vmatprep.subr.bf16.mxu1 %v1402_v24  ;;  %v148_v5 = vadd.f32 %v126_v61, %v98_v63  ;;  %v47_v15 = vld [vmem:[%s1769_s0 + $0x20] sm:$0xff]  ;;  %v93_v18 = vmul.f32 %v56_v12, %v43_v14  ;;  %v1491_v52 = vld [vmem:[#allocation4 + $0x344] ss:$8 sps:$4 sm:$0xff]   ;;  %v1492_v63 = vld [vmem:[#allocation4 + $0x150] ss:$8 sps:$4 sm:$0xff]  }
  0x2a   :  { %1033 = vmatprep.subr.bf16.mxu0 %v1404_v25  ;;  %v152_v9 = vpack.c.bf16 %v144_v4, %v144_v4  ;;  %v97_v20 = vmul.f32 %v72_v13, %v47_v15  ;;  %v1454_v22 = vld [vmem:[#allocation4 + $0xe0] ss:$8 sps:$4 sm:$0xff]   ;;  %v1456_v24 = vld [vmem:[#allocation4 + $0xf4] ss:$8 sps:$4 sm:$0xff]   ;;  %v1500_v4 = vld [vmem:[#allocation4 + $0x164] ss:$8 sps:$4 sm:$0xff]   ;;  %v114_v13 = vrot.slane %v1669_v54, %v63_v59  ;;  %v130_v14 = vrot.slane %v1669_v54, %v79_v62 }
  0x2b   :  { %v156_v10 = vpack.c.bf16 %v148_v5, %v148_v5  ;;  %v1455_v23 = vld [vmem:[#allocation4 + $0x2e0] ss:$8 sps:$4 sm:$0xff]   ;;  %v1458_v25 = vld [vmem:[#allocation4 + $0x2f4] ss:$8 sps:$4 sm:$0xff]   ;;  %v1503_v5 = vld [vmem:[#allocation4 + $0x364] ss:$8 sps:$4 sm:$0xff]  }
  0x2c   :  { %952 = vmatpush1.bf16.msra.mxu1 %v1406_v26  ;;  %971 = vmatprep.mubr.bf16.mxu1 %v152_v9  ;;  %v143_v26 = vadd.f32 %v106_v19, %v93_v18  ;;  %v1486_v57 = vld [vmem:[#allocation4 + $0x140] ss:$8 sps:$4 sm:$0xff]   ;;  %v1494_v60 = vld [vmem:[#allocation4 + $0x154] ss:$8 sps:$4 sm:$0xff]   ;;  %v49_v18 = vld [vmem:[%s1769_s0 + $0x30] sm:$0xff] }
  0x2d   :  { %1034 = vmatpush1.bf16.msra.mxu0 %v1407_v27  ;;  %953 = vmatprep.subr.bf16.mxu1 %v1408_v28  ;;  %v147_v27 = vadd.f32 %v122_v21, %v97_v20  ;;  %v1460_v28 = vld [vmem:[#allocation4 + $0xf0] ss:$8 sps:$4 sm:$0xff]   ;;  %v1489_v58 = vld [vmem:[#allocation4 + $0x340] ss:$8 sps:$4 sm:$0xff]   ;;  %v1497_v61 = vld [vmem:[#allocation4 + $0x354] ss:$8 sps:$4 sm:$0xff]  }
  0x2e   :  { %1035 = vmatprep.subr.bf16.mxu0 %v1410_v29  ;;  %1053 = vmatprep.mubr.bf16.mxu0 %v156_v10  ;;  %v1461_v29 = vld [vmem:[#allocation4 + $0x2f0] ss:$8 sps:$4 sm:$0xff]   ;;  %v1498_v10 = vld [vmem:[#allocation4 + $0x160] ss:$8 sps:$4 sm:$0xff]   ;;  %v1506_v19 = vld [vmem:[#allocation4 + $0x174] ss:$8 sps:$4 sm:$0xff]  }
  0x2f   :  { %v50_v12 = vld [vmem:[%s1769_s0 + $0x38] sm:$0xff] }
  0x30   :  { %954 = vmatpush1.bf16.msra.mxu1 %v1412_v30  ;;  %v1464_v30 = vld [vmem:[#allocation4 + $0x104] ss:$8 sps:$4 sm:$0xff]   ;;  %v1509_v20 = vld [vmem:[#allocation4 + $0x374] ss:$8 sps:$4 sm:$0xff]  }
  0x31   :  { %1036 = vmatpush1.bf16.msra.mxu0 %v1413_v31  ;;  %955 = vmatprep.subr.bf16.mxu1 %v1414_v32  ;;  %v1467_v31 = vld [vmem:[#allocation4 + $0x304] ss:$8 sps:$4 sm:$0xff]   ;;  %v151_v32 = vpack.c.bf16 %v143_v26, %v143_v26  ;;  %v1504_v26 = vld [vmem:[#allocation4 + $0x170] ss:$8 sps:$4 sm:$0xff]  }
  0x32   :  { %1037 = vmatprep.subr.bf16.mxu0 %v1416_v33  ;;  %v155_v33 = vpack.c.bf16 %v147_v27, %v147_v27  ;;  %v1507_v27 = vld [vmem:[#allocation4 + $0x370] ss:$8 sps:$4 sm:$0xff]  }
  0x34   :  { %956 = vmatpush1.bf16.msra.mxu1 %v1418_v34  ;;  %v1462_v34 = vld [vmem:[#allocation4 + $0x100] ss:$8 sps:$4 sm:$0xff]  }
  0x35   :  { %1038 = vmatpush1.bf16.msra.mxu0 %v1419_v35  ;;  %957 = vmatprep.subr.bf16.mxu1 %v1420_v36  ;;  %v1465_v35 = vld [vmem:[#allocation4 + $0x300] ss:$8 sps:$4 sm:$0xff]   ;;  %v1470_v36 = vld [vmem:[#allocation4 + $0x114] ss:$8 sps:$4 sm:$0xff]  }
  0x36   :  { %1039 = vmatprep.subr.bf16.mxu0 %v1422_v38  ;;  %v1473_v38 = vld [vmem:[#allocation4 + $0x314] ss:$8 sps:$4 sm:$0xff]  }
  0x38   :  { %958 = vmatpush1.bf16.msra.mxu1 %v1424_v39  ;;  %v1468_v39 = vld [vmem:[#allocation4 + $0x110] ss:$8 sps:$4 sm:$0xff]  }
  0x39   :  { %1040 = vmatpush1.bf16.msra.mxu0 %v1425_v40  ;;  %959 = vmatprep.subr.bf16.mxu1 %v1426_v41  ;;  %v1471_v40 = vld [vmem:[#allocation4 + $0x310] ss:$8 sps:$4 sm:$0xff]   ;;  %v1476_v41 = vld [vmem:[#allocation4 + $0x124] ss:$8 sps:$4 sm:$0xff]  }
  0x3a   :  { %1041 = vmatprep.subr.bf16.mxu0 %v1428_v43  ;;  %v1479_v43 = vld [vmem:[#allocation4 + $0x324] ss:$8 sps:$4 sm:$0xff]  }
  0x3c   :  { %960 = vmatpush1.bf16.msra.mxu1 %v1430_v44  ;;  %v1474_v44 = vld [vmem:[#allocation4 + $0x120] ss:$8 sps:$4 sm:$0xff]  }
  0x3d   :  { %1042 = vmatpush1.bf16.msra.mxu0 %v1431_v45  ;;  %961 = vmatprep.subr.bf16.mxu1 %v1432_v46  ;;  %v1477_v45 = vld [vmem:[#allocation4 + $0x320] ss:$8 sps:$4 sm:$0xff]   ;;  %v1482_v46 = vld [vmem:[#allocation4 + $0x134] ss:$8 sps:$4 sm:$0xff]  }
  0x3e   :  { %1043 = vmatprep.subr.bf16.mxu0 %v1434_v49  ;;  %v1480_v49 = vld [vmem:[#allocation4 + $0x130] ss:$8 sps:$4 sm:$0xff]  }
  0x40   :  { %962 = vmatpush1.bf16.msra.mxu1 %v1436_v50  ;;  %v1483_v50 = vld [vmem:[#allocation4 + $0x330] ss:$8 sps:$4 sm:$0xff]  }
  0x41   :  { %1044 = vmatpush1.bf16.msra.mxu0 %v1437_v51  ;;  %963 = vmatprep.subr.bf16.mxu1 %v1438_v55  ;;  %v1488_v51 = vld [vmem:[#allocation4 + $0x144] ss:$8 sps:$4 sm:$0xff]   ;;  %v67_v55 = vsub.s32 3, %v1652_v42 }
  0x42   :  { %1045 = vmatprep.subr.bf16.mxu0 %v1440_v56  ;;  %v83_v56 = vsub.s32 7, %v1652_v42 }
  0x44   :  { %964 = vmatpush1.bf16.msra.mxu1 %v1442_v2  ;;  %v68_v2 = vrot.slane %v1664_v53, %v67_v55  ;;  %v134_v9 = vrot.slane %v1669_v54, %v83_v56 }
  0x45   :  { %1046 = vmatpush1.bf16.msra.mxu0 %v1443_v3  ;;  %965 = vmatprep.subr.bf16.mxu1 %v1444_v6  ;;  %v84_v3 = vrot.slane %v1664_v53, %v83_v56  ;;  %v64_v6 = vrot.slane %v1664_v53, %v63_v59  ;;  %v1545_v56 = vld [vmem:[#allocation4 + $0x3d4] ss:$8 sps:$4 sm:$0xff]   ;;  %v1548_v59 = vld [vmem:[#allocation4 + $0x1e4] ss:$8 sps:$4 sm:$0xff]  }
  0x46   :  { %1047 = vmatprep.subr.bf16.mxu0 %v1446_v7  ;;  %v80_v7 = vrot.slane %v1664_v53, %v79_v62  ;;  %v1501_v53 = vld [vmem:[#allocation4 + $0x360] ss:$8 sps:$4 sm:$0xff]  }
  0x47   :  { %v1549_v62 = vld [vmem:[#allocation4 + $0x3e0] ss:$8 sps:$4 sm:$0xff]  }
  0x48   :  { %966 = vmatpush1.bf16.msra.mxu1 %v1448_v8  ;;  %v118_v8 = vrot.slane %v1669_v54, %v67_v55  ;;  %v1542_v55 = vld [vmem:[#allocation4 + $0x1d4] ss:$8 sps:$4 sm:$0xff]  }
  0x49   :  { %1048 = vmatpush1.bf16.msra.mxu0 %v1449_v11  ;;  %967 = vmatprep.subr.bf16.mxu1 %v1450_v16  ;;  %v46_v11 = vld [vmem:[%s1769_s0 + $0x18] sm:$0xff]  ;;  %v100_v16 = vmul.f32 %v84_v3, %v50_v12 }
  0x4a   :  { %1049 = vmatprep.subr.bf16.mxu0 %v1452_v17  ;;  %v96_v15 = vmul.f32 %v68_v2, %v46_v11  ;;  %v45_v17 = vld [vmem:[%s1769_s0 + $0x10] sm:$0xff] }
  0x4b   :  { %v95_v21 = vmul.f32 %v64_v6, %v45_v17  ;;  %v1552_v2 = vld [vmem:[#allocation4 + $0x1f0] ss:$8 sps:$4 sm:$0xff]  }
  0x4c   :  { %968 = vmatpush1.bf16.msra.mxu1 %v1454_v22  ;;  %v99_v22 = vmul.f32 %v80_v7, %v49_v18  ;;  %v146_v54 = vadd.f32 %v118_v8, %v96_v15  ;;  %v1555_v3 = vld [vmem:[#allocation4 + $0x3f0] ss:$8 sps:$4 sm:$0xff]   ;;  %v1587_v7 = vmov 0.0   ;;  %v287_v8 = vld [vmem:[%s1773_s4] sm:$0x3] }
  0x4d   :  { %1050 = vmatpush1.bf16.msra.mxu0 %v1455_v23  ;;  %969 = vmatprep.subr.bf16.mxu1 %v1456_v24  ;;  %v150_v23 = vadd.f32 %v134_v9, %v100_v16  ;;  %v1720_v24 = vadd.f32 %v114_v13, %v95_v21  ;;  %1113 = vst.msk [vmem:[#allocation2] sm:$0x3] %vm1729_vm0, %v1587_v7  ;;  %1114 = vst.msk [vmem:[#allocation3] sm:$0x3] %vm1729_vm0, %v1587_v7 }
  0x4e   :  { %1051 = vmatprep.subr.bf16.mxu0 %v1458_v25  ;;  %v1722_v25 = vadd.f32 %v130_v14, %v99_v22  ;;  %v292_v9 = vrot.slane %v287_v8, %v1681_v0 }
  0x50   :  { %970 = vmatpush1.bf16.msra.mxu1 %v1460_v28  ;;  %v154_v28 = vpack.c.bf16 %v146_v54, %v146_v54 }
  0x51   :  { %1052 = vmatpush1.bf16.msra.mxu0 %v1461_v29  ;;  %980 = vmatprep.subr.bf16.mxu1 %v1464_v30  ;;  %v158_v29 = vpack.c.bf16 %v150_v23, %v150_v23  ;;  %v1512_v30 = vld [vmem:[#allocation4 + $0x184] ss:$8 sps:$4 sm:$0xff]  }
  0x52   :  { %1062 = vmatprep.subr.bf16.mxu0 %v1467_v31  ;;  %v1515_v31 = vld [vmem:[#allocation4 + $0x384] ss:$8 sps:$4 sm:$0xff]  }
  0x53   :  { %972 = vmatmul.mubr.bf16.vlgmr.msra.gmra.mrb[0].mxu1 %v151_v32  ;;  %v1510_v32 = vld [vmem:[#allocation4 + $0x180] ss:$8 sps:$4 sm:$0xff]  }
  0x54   :  { %1054 = vmatmul.mubr.bf16.vlgmr.msra.gmra.mrb[0].mxu0 %v155_v33  ;;  %981 = vmatpush1.bf16.msra.mxu1 %v1462_v34  ;;  %v1513_v33 = vld [vmem:[#allocation4 + $0x380] ss:$8 sps:$4 sm:$0xff]   ;;  %v1518_v34 = vld [vmem:[#allocation4 + $0x194] ss:$8 sps:$4 sm:$0xff]  }
  0x55   :  { %1063 = vmatpush1.bf16.msra.mxu0 %v1465_v35  ;;  %982 = vmatprep.subr.bf16.mxu1 %v1470_v36  ;;  %v1521_v35 = vld [vmem:[#allocation4 + $0x394] ss:$8 sps:$4 sm:$0xff]   ;;  %v1516_v36 = vld [vmem:[#allocation4 + $0x190] ss:$8 sps:$4 sm:$0xff]  }
  0x56   :  { %1064 = vmatprep.subr.bf16.mxu0 %v1473_v38  ;;  %1012 = vmatprep.mubr.bf16.mxu1 %v154_v28  ;;  %v1519_v38 = vld [vmem:[#allocation4 + $0x390] ss:$8 sps:$4 sm:$0xff]  }
  0x57   :  { %1094 = vmatprep.mubr.bf16.mxu0 %v158_v29 }
  0x58   :  { %983 = vmatpush1.bf16.msra.mxu1 %v1468_v39  ;;  %v1524_v39 = vld [vmem:[#allocation4 + $0x1a4] ss:$8 sps:$4 sm:$0xff]  }
  0x59   :  { %1065 = vmatpush1.bf16.msra.mxu0 %v1471_v40  ;;  %984 = vmatprep.subr.bf16.mxu1 %v1476_v41  ;;  %v1527_v40 = vld [vmem:[#allocation4 + $0x3a4] ss:$8 sps:$4 sm:$0xff]   ;;  %v1522_v41 = vld [vmem:[#allocation4 + $0x1a0] ss:$8 sps:$4 sm:$0xff]  }
  0x5a   :  { %1066 = vmatprep.subr.bf16.mxu0 %v1479_v43  ;;  %v1525_v43 = vld [vmem:[#allocation4 + $0x3a0] ss:$8 sps:$4 sm:$0xff]  }
  0x5c   :  { %985 = vmatpush1.bf16.msra.mxu1 %v1474_v44  ;;  %v1530_v44 = vld [vmem:[#allocation4 + $0x1b4] ss:$8 sps:$4 sm:$0xff]  }
  0x5d   :  { %1067 = vmatpush1.bf16.msra.mxu0 %v1477_v45  ;;  %986 = vmatprep.subr.bf16.mxu1 %v1482_v46  ;;  %v1533_v45 = vld [vmem:[#allocation4 + $0x3b4] ss:$8 sps:$4 sm:$0xff]   ;;  %v1528_v46 = vld [vmem:[#allocation4 + $0x1b0] ss:$8 sps:$4 sm:$0xff]  }
  0x5e   :  { %1068 = vmatprep.subr.bf16.mxu0 %v1485_v48  ;;  %v1531_v48 = vld [vmem:[#allocation4 + $0x3b0] ss:$8 sps:$4 sm:$0xff]  }
  0x60   :  { %987 = vmatpush1.bf16.msra.mxu1 %v1480_v49  ;;  %v1536_v49 = vld [vmem:[#allocation4 + $0x1c4] ss:$8 sps:$4 sm:$0xff]  }
  0x61   :  { %1069 = vmatpush1.bf16.msra.mxu0 %v1483_v50  ;;  %988 = vmatprep.subr.bf16.mxu1 %v1488_v51  ;;  %v1539_v50 = vld [vmem:[#allocation4 + $0x3c4] ss:$8 sps:$4 sm:$0xff]   ;;  %v1534_v51 = vld [vmem:[#allocation4 + $0x1c0] ss:$8 sps:$4 sm:$0xff]  }
  0x62   :  { %1070 = vmatprep.subr.bf16.mxu0 %v1491_v52  ;;  %v1537_v52 = vld [vmem:[#allocation4 + $0x3c0] ss:$8 sps:$4 sm:$0xff]  }
  0x64   :  { %989 = vmatpush1.bf16.msra.mxu1 %v1486_v57  ;;  %v1540_v57 = vld [vmem:[#allocation4 + $0x1d0] ss:$8 sps:$4 sm:$0xff]  }
  0x65   :  { %1071 = vmatpush1.bf16.msra.mxu0 %v1489_v58  ;;  %990 = vmatprep.subr.bf16.mxu1 %v1494_v60  ;;  %v1543_v58 = vld [vmem:[#allocation4 + $0x3d0] ss:$8 sps:$4 sm:$0xff]   ;;  %v1551_v60 = vld [vmem:[#allocation4 + $0x3e4] ss:$8 sps:$4 sm:$0xff]  }
  0x66   :  { %1072 = vmatprep.subr.bf16.mxu0 %v1497_v61  ;;  %v1546_v61 = vld [vmem:[#allocation4 + $0x1e0] ss:$8 sps:$4 sm:$0xff]  }
  0x68   :  { %991 = vmatpush1.bf16.msra.mxu1 %v1492_v63  ;;  %v1554_v63 = vld [vmem:[#allocation4 + $0x1f4] ss:$8 sps:$4 sm:$0xff]  }
  0x69   :  { %1073 = vmatpush1.bf16.msra.mxu0 %v1495_v1  ;;  %992 = vmatprep.subr.bf16.mxu1 %v1500_v4  ;;  %v1557_v1 = vld [vmem:[#allocation4 + $0x3f4] ss:$8 sps:$4 sm:$0xff]   ;;  %v153_v4 = vpack.c.bf16 %v1720_v24, %v1720_v24 }
  0x6a   :  { %1074 = vmatprep.subr.bf16.mxu0 %v1503_v5  ;;  %v157_v5 = vpack.c.bf16 %v1722_v25, %v1722_v25 }
  0x6c   :  { %993 = vmatpush1.bf16.msra.mxu1 %v1498_v10  ;;  %v296_v10 = vrot.slane %v287_v8, %v1655_v47 }
  0x6d   :  { %1075 = vmatpush1.bf16.msra.mxu0 %v1501_v53  ;;  %994 = vmatprep.subr.bf16.mxu1 %v1506_v19 }
  0x6e   :  { %1076 = vmatprep.subr.bf16.mxu0 %v1509_v20 }
  0x70   :  { %995 = vmatpush1.bf16.msra.mxu1 %v1504_v26 }
  0x71   :  { %1077 = vmatpush1.bf16.msra.mxu0 %v1507_v27  ;;  %996 = vmatprep.subr.bf16.mxu1 %v1512_v30  ;;  %v1588_v27 = vmov 1966171168  }
  0x72   :  { %1078 = vmatprep.subr.bf16.mxu0 %v1515_v31  ;;  %v1134_v28 = vunpack.c.l.s4 %v1588_v27 }
  0x74   :  { %997 = vmatpush1.bf16.msra.mxu1 %v1510_v32 }
  0x75   :  { %1079 = vmatpush1.bf16.msra.mxu0 %v1513_v33  ;;  %998 = vmatprep.subr.bf16.mxu1 %v1518_v34 }
  0x76   :  { %1080 = vmatprep.subr.bf16.mxu0 %v1521_v35 }
  0x78   :  { %999 = vmatpush1.bf16.msra.mxu1 %v1516_v36 }
  0x79   :  { %1081 = vmatpush1.bf16.msra.mxu0 %v1519_v38  ;;  %1000 = vmatprep.subr.bf16.mxu1 %v1524_v39  ;;  %v1135_v38 = vunpack.c.0.s8 %v1134_v28 }
  0x7a   :  { %1082 = vmatprep.subr.bf16.mxu0 %v1527_v40 }
  0x7c   :  { %1001 = vmatpush1.bf16.msra.mxu1 %v1522_v41 }
  0x7d   :  { %1083 = vmatpush1.bf16.msra.mxu0 %v1525_v43  ;;  %1002 = vmatprep.subr.bf16.mxu1 %v1530_v44 }
  0x7e   :  { %1084 = vmatprep.subr.bf16.mxu0 %v1533_v45 }
  0x80   :  { %1003 = vmatpush1.bf16.msra.mxu1 %v1528_v46 }
  0x81   :  { %1085 = vmatpush1.bf16.msra.mxu0 %v1531_v48  ;;  %1004 = vmatprep.subr.bf16.mxu1 %v1536_v49  ;;  %v1138_v49 = vsub.s32 %v1135_v38, %v1652_v42 }
  0x82   :  { %1086 = vmatprep.subr.bf16.mxu0 %v1539_v50 }
  0x84   :  { %1005 = vmatpush1.bf16.msra.mxu1 %v1534_v51 }
  0x85   :  { %1087 = vmatpush1.bf16.msra.mxu0 %v1537_v52  ;;  %1006 = vmatprep.subr.bf16.mxu1 %v1542_v55 }
  0x86   :  { %1088 = vmatprep.subr.bf16.mxu0 %v1545_v56 }
  0x88   :  { %1007 = vmatpush1.bf16.msra.mxu1 %v1540_v57 }
  0x89   :  { %1089 = vmatpush1.bf16.msra.mxu0 %v1543_v58  ;;  %1008 = vmatprep.subr.bf16.mxu1 %v1548_v59  ;;  %v1117_v58 = vld [vmem:[#allocation2] sm:$0x3] }
  0x8a   :  { %1090 = vmatprep.subr.bf16.mxu0 %v1551_v60 }
  0x8c   :  { %1009 = vmatpush1.bf16.msra.mxu1 %v1546_v61  ;;  %v1154_v61 = vld [vmem:[#allocation3] sm:$0x3] }
  0x8d   :  { %1091 = vmatpush1.bf16.msra.mxu0 %v1549_v62  ;;  %1010 = vmatprep.subr.bf16.mxu1 %v1554_v63 }
  0x8e   :  { %1092 = vmatprep.subr.bf16.mxu0 %v1557_v1 }
  0x90   :  { %1011 = vmatpush1.bf16.msra.mxu1 %v1552_v2 }
  0x91   :  { %1093 = vmatpush1.bf16.msra.mxu0 %v1555_v3 }
  0x93   :  { %1013 = vmatmul.mubr.bf16.vlgmr.msra.gmra.mrb[0].mxu1 %v153_v4 }
  0x94   :  { %1095 = vmatmul.mubr.bf16.vlgmr.msra.gmra.mrb[0].mxu0 %v157_v5 }
 0x166   :  { %v1014_v11 = vpop.f32.mrb[0].mxu1 }
 0x167   :  { %v1096_v37 = vpop.f32.mrb[0].mxu0  ;;  %v1349_v12 = vadd.f32 %v1014_v11, %v292_v9  ;;  %v1016_v13 = vpop.f32.mrb[1].mxu1 }
 0x168   :  { %v1098_v14 = vpop.f32.mrb[1].mxu0  ;;  %v1351_v53 = vadd.f32 %v1016_v13, %v296_v10  ;;  %v1018_v15 = vpop.f32.mrb[2].mxu1  ;;  %v1199_v10 = vld [vmem:[%s1774_s5] sm:$0x3] }
 0x169   :  { %v1100_v16 = vpop.f32.mrb[2].mxu0  ;;  %v1350_v17 = vadd.f32 %v1349_v12, %v1096_v37  ;;  %v1019_v18 = vpop.f32.mrb[3].mxu1  ;;  %v1204_v12 = vld [vmem:[%s1775_s6] sm:$0x3] }
 0x16a   :  { %v1101_v19 = vpop.f32.mrb[3].mxu0  ;;  %v1352_v20 = vadd.f32 %v1351_v53, %v1098_v14 }
 0x16b   :  { %v1103_v21 = vmax.f32 %v1350_v17, 0.0 }
 0x16c   :  { %v1104_v22 = vmax.f32 %v1352_v20, 0.0 }
 0x16d   :  { %1115 = vst [vmem:[%s1776_s7] sm:$0xff] %v1103_v21  ;;  %v1118_v0 = vrot.slane %v1103_v21, 4  ;;  %v1155_v47 = vmul.f32 %v1103_v21, %v1103_v21 }
 0x16e   :  { %1116 = vst [vmem:[%s1776_s7 + $0x8] sm:$0xff] %v1104_v22  ;;  %v1124_v54 = vrot.slane %v1104_v22, 4  ;;  %v1156_v23 = vmul.f32 %v1104_v22, %v1104_v22 }
 0x16f   :  { %v1119_v24 = vadd.f32 %v1118_v0, %v1103_v21  ;;  %v1157_v25 = vrot.slane %v1155_v47, 4 }
 0x170   :  { %v1125_v26 = vadd.f32 %v1124_v54, %v1104_v22  ;;  %v1163_v29 = vrot.slane %v1156_v23, 4 }
 0x171   :  { %v1120_v30 = vrot.slane %v1119_v24, 2  ;;  %v1158_v31 = vadd.f32 %v1157_v25, %v1155_v47 }
 0x172   :  { %v1126_v32 = vrot.slane %v1125_v26, 2  ;;  %v1164_v33 = vadd.f32 %v1163_v29, %v1156_v23 }
 0x173   :  { %v1121_v34 = vadd.f32 %v1120_v30, %v1119_v24  ;;  %v1159_v35 = vrot.slane %v1158_v31, 2 }
 0x174   :  { %v1127_v36 = vadd.f32 %v1126_v32, %v1125_v26  ;;  %v1165_v39 = vrot.slane %v1164_v33, 2 }
 0x175   :  { %v1122_v40 = vrot.slane %v1121_v34, 1  ;;  %v1160_v41 = vadd.f32 %v1159_v35, %v1158_v31 }
 0x176   :  { %v1128_v43 = vrot.slane %v1127_v36, 1  ;;  %v1166_v44 = vadd.f32 %v1165_v39, %v1164_v33 }
 0x177   :  { %v1123_v45 = vadd.f32 %v1122_v40, %v1121_v34  ;;  %v1161_v46 = vrot.slane %v1160_v41, 1 }
 0x178   :  { %v1129_v48 = vadd.f32 %v1128_v43, %v1127_v36  ;;  %v1167_v50 = vrot.slane %v1166_v44, 1 }
 0x179   :  { %v1162_v51 = vadd.f32 %v1161_v46, %v1160_v41 }
 0x17a   :  { %v1132_v52 = vcombine.low %v1123_v45, %v1129_v48  ;;  %v1168_v55 = vadd.f32 %v1167_v50, %v1166_v44 }
 0x17c   :  { %v1139_v56 = vrot.slane %v1132_v52, %v1138_v49  ;;  %v1171_v57 = vcombine.low %v1162_v51, %v1168_v55 }
 0x17e   :  { %v1146_v59 = vrot.slane %v1139_v56, %v1138_v49  ;;  %v1178_v60 = vrot.slane %v1171_v57, %v1138_v49 }
 0x180   :  { %v1148_v62 = vadd.f32 %v1146_v59, %v1117_v58  ;;  %v1185_v63 = vrot.slane %v1178_v60, %v1138_v49 }
 0x182   :  { %1153 = vst.msk [vmem:[#allocation2] sm:$0x3] %vm1729_vm0, %v1148_v62  ;;  %v1187_v1 = vadd.f32 %v1185_v63, %v1154_v61 }
 0x184   :  { %1188 = vst.msk [vmem:[#allocation3] sm:$0x3] %vm1729_vm0, %v1187_v1 }
 0x189   :  { %v1192_v42 = vld [vmem:[#allocation2] sm:$0x3] }
 0x18a   :  { %v1193_v2 = vmul.f32 0.125, %v1192_v42 }
 0x18b   :  { %v1194_v3 = vld [vmem:[#allocation3] sm:$0x3] }
 0x18c   :  { %v1195_v4 = vmul.f32 0.125, %v1194_v3  ;;  %v1196_v5 = vmul.f32 %v1193_v2, %v1193_v2 }
 0x18e   :  { %v1197_v7 = vsub.f32 %v1195_v4, %v1196_v5 }
 0x190   :  { %v1198_v8 = vmax.f32 %v1197_v7, 0.0 }
 0x192   :  { %v1200_v9 = vadd.f32 1e-05, %v1198_v8 }
 0x194   :  { %1558 = vrsqrt.f32 %v1200_v9 }
 0x19e   :  { %v1559_v11 = vpop.eup %1558 }
 0x19f   :  { %v1202_v37 = vmul.f32 %v1559_v11, %v1199_v10 }
 0x1a1   :  { %1203 = vst.msk [vmem:[%s1777_s8] sm:$0x3] %vm1729_vm0, %v1202_v37  ;;  %v1205_v13 = vmul.f32 %v1202_v37, %v1193_v2 }
 0x1a3   :  { %v1206_v14 = vsub.f32 %v1204_v12, %v1205_v13 }
 0x1a5   :  { %1207 = vst.msk [vmem:[%s1778_s9] sm:$0x3] %vm1729_vm0, %v1206_v14 }
 0x1a6   :  { %1220 = vsyncpa [#allocation5], 1 }

</bundles_post_ra>
